<compile_context>
chip_gen: v6e
topology: v6e:2x2x1
jax: 0.10.0
libtpu: 0.0.40
codegen_flags: <defaults>
</compile_context>

<pallas_src>
import functools

import jax
import jax.numpy as jnp
from jax.experimental import pallas as pl
from jax.experimental.pallas import tpu as pltpu

_EPS = 1e-5
_LANES = 128


def _round_up(x, m):
    return (x + m - 1) // m * m


# ---------------------------------------------------------------------------
# Kernel 1: per-channel batch stats -> per-channel scale / shift
# ---------------------------------------------------------------------------
def _bn_stats_kernel(x_ref, gamma_ref, beta_ref, scale_ref, shift_ref,
                     sum_acc, sq_acc, *, total_rows, count, eps):
    t = pl.program_id(0)

    @pl.when(t == 0)
    def _init():
        sum_acc[...] = jnp.zeros_like(sum_acc)
        sq_acc[...] = jnp.zeros_like(sq_acc)

    x = x_ref[...].astype(jnp.float32)                          # (TILE_R, C)
    tile_rows = x.shape[0]
    row = jax.lax.broadcasted_iota(jnp.int32, (tile_rows, 1), 0) + t * tile_rows
    x = jnp.where(row < total_rows, x, 0.0)                     # mask ragged tail
    sum_acc[...] += jnp.sum(x, axis=0, keepdims=True)
    sq_acc[...] += jnp.sum(x * x, axis=0, keepdims=True)

    @pl.when(t == pl.num_programs(0) - 1)
    def _finalize():
        inv_n = jnp.float32(1.0 / count)
        mean = sum_acc[...] * inv_n
        # E[x^2] - mean^2 in f32, clamped at 0 (cancellation caveat documented above).
        var = jnp.maximum(sq_acc[...] * inv_n - mean * mean, 0.0)
        sc = gamma_ref[...] * jax.lax.rsqrt(var + jnp.float32(eps))
        scale_ref[...] = sc
        shift_ref[...] = beta_ref[...] - mean * sc


def _stats_tile_rows(m, c, itemsize, target_bytes=2 << 20, cap=8192):
    """Row tile targeting ~2 MiB per block (multiple of 8), never one giant block."""
    rows = max(8, min(cap, target_bytes // max(1, c * itemsize)))
    rows = int(rows) // 8 * 8
    return int(min(rows, _round_up(m, 8)))


# ---------------------------------------------------------------------------
# Kernel 2: fused BN(scale/shift) + ReLU + KxK conv (K-packed single MXU matmul)
# ---------------------------------------------------------------------------
def _fused_bn_relu_conv_kernel(scale_ref, shift_ref, x_ref, w_ref, o_ref, *,
                               H, W, C, KH, KW, sh, sw, ph, pw, Hout, Wout, use_relu):
    # --- BN scale/shift + optional ReLU (f32 math), single bf16 cast ---
    x = x_ref[0].astype(jnp.float32)                            # (H, W, C)
    y = x * scale_ref[...].reshape(1, 1, C) + shift_ref[...].reshape(1, 1, C)
    if use_relu:
        y = jnp.maximum(y, 0.0)
    y = y.astype(jnp.bfloat16)                                  # bf16 staging

    # --- zero padding via border-only zero slabs (interior never zero-filled) ---
    if ph > 0:
        zr = jnp.zeros((ph, W, C), jnp.bfloat16)
        y = jnp.concatenate([zr, y, zr], axis=0)
    if pw > 0:
        zc = jnp.zeros((H + 2 * ph, pw, C), jnp.bfloat16)
        y = jnp.concatenate([zc, y, zc], axis=1)
    # y: (H + 2*ph, W + 2*pw, C) bf16

    # --- KH*KW shifted windows (static slices; strided only when stride > 1) ---
    wins = []
    for i in range(KH):
        for j in range(KW):
            lim = (i + (Hout - 1) * sh + 1, j + (Wout - 1) * sw + 1, C)
            if sh == 1 and sw == 1:
                win = jax.lax.slice(y, (i, j, 0), lim)
            else:
                win = jax.lax.slice(y, (i, j, 0), lim, (sh, sw, 1))
            wins.append(win)                                    # (Hout, Wout, C)

    cout_pad = o_ref.shape[-1]
    if C >= 128 and len(wins) > 1:
        # Cin already fills the MXU depth: keep the shifted-matmul form.
        acc = jnp.zeros((Hout * Wout, cout_pad), jnp.float32)
        for t, win in enumerate(wins):
            lhs = win.reshape(Hout * Wout, C)
            acc = acc + jnp.dot(lhs, w_ref[pl.ds(t * C, C), :],
                                preferred_element_type=jnp.float32)
    else:
        # K-packed im2col built in VMEM: ONE MXU matmul with K = KH*KW*C.
        packed = wins[0] if len(wins) == 1 else jnp.concatenate(wins, axis=-1)
        lhs = packed.reshape(Hout * Wout, KH * KW * C)
        acc = jnp.dot(lhs, w_ref[...], preferred_element_type=jnp.float32)

    # Lane-dense (Hout*Wout, Cout_pad) store — unmasked vst, padding sliced off in wrapper.
    o_ref[0] = acc.astype(o_ref.dtype)


def _vmem_limit_bytes(requested):
    try:
        cap = int(pltpu.get_tpu_info().vmem_capacity_bytes)
    except Exception:
        cap = 64 * 1024 * 1024                                  # v7x physical per-TC
    hi = int(0.9 * cap)
    return int(min(hi, max(32 * 1024 * 1024, requested)))


# ---------------------------------------------------------------------------
# Wrapper: ResBlock forward (PyTorch NCHW in / NCHW out)
# ---------------------------------------------------------------------------
def res_block_forward(x_nchw, gamma, beta, weight, *, stride=1, padding=1,
                      use_relu=True, eps=_EPS):
    """BN (training-mode batch stats) -> optional ReLU -> Conv2d(bias=False)."""
    n, cin, h, w = x_nchw.shape
    cout, cin_w, kh, kw = weight.shape
    assert cin_w == cin, (cin_w, cin)
    sh, sw = (stride, stride) if isinstance(stride, int) else tuple(stride)
    ph, pw = (padding, padding) if isinstance(padding, int) else tuple(padding)
    hout = (h + 2 * ph - kh) // sh + 1
    wout = (w + 2 * pw - kw) // sw + 1
    cout_pad = _round_up(cout, _LANES)
    kdim = kh * kw * cin

    # NHWC copy, kept in the input dtype (no f32 upcast in HBM).
    # TODO(synk): fold this transpose into the stats pass to save one HBM round trip.
    x_nhwc = jnp.transpose(x_nchw, (0, 2, 3, 1))

    # ---------------- pass 1: batch stats -> per-channel scale / shift ----------------
    m = n * h * w
    x2d = x_nhwc.reshape(m, cin)
    tile_rows = _stats_tile_rows(m, cin, x2d.dtype.itemsize)
    grid_rows = pl.cdiv(m, tile_rows)
    stats_kern = functools.partial(_bn_stats_kernel, total_rows=m,
                                   count=float(m), eps=float(eps))
    scale, shift = pl.pallas_call(
        stats_kern,
        out_shape=(jax.ShapeDtypeStruct((1, cin), jnp.float32),
                   jax.ShapeDtypeStruct((1, cin), jnp.float32)),
        grid=(grid_rows,),
        in_specs=[pl.BlockSpec((tile_rows, cin), lambda i: (i, 0)),
                  pl.BlockSpec((1, cin), lambda i: (0, 0)),           # gamma
                  pl.BlockSpec((1, cin), lambda i: (0, 0))],          # beta
        out_specs=(pl.BlockSpec((1, cin), lambda i: (0, 0)),          # scale
                   pl.BlockSpec((1, cin), lambda i: (0, 0))),         # shift
        scratch_shapes=[pltpu.VMEM((1, cin), jnp.float32),
                        pltpu.VMEM((1, cin), jnp.float32)],
        compiler_params=pltpu.CompilerParams(dimension_semantics=("arbitrary",)),
    )(x2d,
      gamma.reshape(1, cin).astype(jnp.float32),
      beta.reshape(1, cin).astype(jnp.float32))

    # ------ packed weights: OIHW -> (KH*KW*Cin, Cout) bf16, zero-padded to 128 lanes ------
    w_packed = jnp.transpose(weight, (2, 3, 1, 0)).reshape(kdim, cout).astype(jnp.bfloat16)
    if cout_pad != cout:
        w_packed = jnp.pad(w_packed, ((0, 0), (0, cout_pad - cout)))

    # ---------------- pass 2: fused BN + ReLU + KxK conv ----------------
    x_bytes = x_nhwc.dtype.itemsize
    o_bytes = jnp.dtype(x_nchw.dtype).itemsize
    est = (2 * h * w * cin * x_bytes                 # double-buffered activation block
           + 2 * kdim * cout_pad * 2                 # packed bf16 weights
           + 2 * hout * wout * cout_pad * o_bytes    # double-buffered output block
           + h * w * cin * 4                         # f32 BN intermediate
           + (h + 2 * ph) * (w + 2 * pw) * cin * 2   # padded bf16 staging
           + hout * wout * kdim * 2                  # packed bf16 im2col lhs
           + hout * wout * cout_pad * 4              # f32 matmul accumulator
           + (1 << 20))                              # headroom
    # TODO(synk): tile over output rows with a (KH - sh)-row halo (manual DMA double
    #             buffering) so large H*W stays under the per-generation VMEM budget;
    #             that axis would also be "parallel" for v7x megacore.

    kern = functools.partial(_fused_bn_relu_conv_kernel,
                             H=h, W=w, C=cin, KH=kh, KW=kw, sh=sh, sw=sw,
                             ph=ph, pw=pw, Hout=hout, Wout=wout,
                             use_relu=bool(use_relu))
    out = pl.pallas_call(
        kern,
        out_shape=jax.ShapeDtypeStruct((n, hout * wout, cout_pad), x_nchw.dtype),
        grid=(n,),
        in_specs=[pl.BlockSpec((1, cin), lambda b: (0, 0)),             # scale
                  pl.BlockSpec((1, cin), lambda b: (0, 0)),             # shift
                  pl.BlockSpec((1, h, w, cin), lambda b: (b, 0, 0, 0)), # activation NHWC
                  pl.BlockSpec((kdim, cout_pad), lambda b: (0, 0))],    # packed weights
        out_specs=pl.BlockSpec((1, hout * wout, cout_pad), lambda b: (b, 0, 0)),
        compiler_params=pltpu.CompilerParams(
            dimension_semantics=("parallel",),
            vmem_limit_bytes=_vmem_limit_bytes(est)),
    )(scale, shift, x_nhwc, w_packed)

    out = out.reshape(n, hout, wout, cout_pad)[..., :cout]
    return jnp.transpose(out, (0, 3, 1, 2))                             # NHWC -> NCHW


# ---------------------------------------------------------------------------
# Pure-JAX reference (validation only)
# ---------------------------------------------------------------------------
def res_block_reference(x_nchw, gamma, beta, weight, *, stride=1, padding=1,
                        use_relu=True, eps=_EPS):
    x = x_nchw.astype(jnp.float32)
    mean = jnp.mean(x, axis=(0, 2, 3), keepdims=True)
    var = jnp.mean((x - mean) ** 2, axis=(0, 2, 3), keepdims=True)      # biased (PyTorch)
    xh = (x - mean) * jax.lax.rsqrt(var + eps)
    xh = xh * gamma.reshape(1, -1, 1, 1) + beta.reshape(1, -1, 1, 1)
    if use_relu:
        xh = jnp.maximum(xh, 0.0)
    strides = (stride, stride) if isinstance(stride, int) else tuple(stride)
    pads = (padding, padding) if isinstance(padding, int) else tuple(padding)
    return jax.lax.conv_general_dilated(
        xh, weight.astype(jnp.float32),
        window_strides=strides,
        padding=[(pads[0], pads[0]), (pads[1], pads[1])],
        dimension_numbers=("NCHW", "OIHW", "NCHW"))


# ---------------------------------------------------------------------------
if __name__ == "__main__":
    key = jax.random.PRNGKey(0)
    kx, kg, kb, kw1, kw2 = jax.random.split(key, 5)

    N, Cin, H, W = 2, 16, 16, 16
    Cout = 32
    x = jax.random.normal(kx, (N, Cin, H, W), jnp.float32)              # NCHW (PyTorch)
    gamma = 1.0 + 0.1 * jax.random.normal(kg, (Cin,), jnp.float32)
    beta = 0.1 * jax.random.normal(kb, (Cin,), jnp.float32)
    w1 = jax.random.normal(kw1, (Cout, Cin, 3, 3), jnp.float32) / jnp.sqrt(9.0 * Cin)

    # Default ResBlock: kernel_size=3, stride=1, padding=1, use_relu=True
    fwd1 = jax.jit(functools.partial(res_block_forward,
                                     stride=1, padding=1, use_relu=True))
    out1 = jax.block_until_ready(fwd1(x, gamma, beta, w1))
    ref1 = res_block_reference(x, gamma, beta, w1, stride=1, padding=1, use_relu=True)
    assert out1.shape == (N, Cout, H, W), out1.shape
    assert bool(jnp.all(jnp.isfinite(out1)))
    # 5e-2 tolerance accounts for the intentional bf16 rounding of matmul operands.
    assert float(jnp.max(jnp.abs(out1 - ref1))) < 5e-2, "3x3 ResBlock mismatch"

    # ResBlock(kernel_size=1, padding=1, use_relu=False) variant (as used by out_path*)
    Cout2 = 8
    w2 = jax.random.normal(kw2, (Cout2, Cin, 1, 1), jnp.float32) / jnp.sqrt(float(Cin))
    fwd2 = jax.jit(functools.partial(res_block_forward,
                                     stride=1, padding=1, use_relu=False))
    out2 = jax.block_until_ready(fwd2(x, gamma, beta, w2))
    ref2 = res_block_reference(x, gamma, beta, w2, stride=1, padding=1, use_relu=False)
    assert out2.shape == (N, Cout2, H + 2, W + 2), out2.shape
    assert bool(jnp.all(jnp.isfinite(out2)))
    assert float(jnp.max(jnp.abs(out2 - ref2))) < 5e-2, "1x1 ResBlock mismatch"

    print("KERNEL_OK")
</pallas_src>

<mosaic_0001>
module attributes {stable_mosaic.version = 11 : i64} {
  func.func @_bn_stats_kernel(%arg0: i32, %arg1: memref<512x16xf32, #tpu.memory_space<vmem>>, %arg2: memref<1x16xf32, #tpu.memory_space<vmem>>, %arg3: memref<1x16xf32, #tpu.memory_space<vmem>>, %arg4: memref<1x16xf32, #tpu.memory_space<vmem>>, %arg5: memref<1x16xf32, #tpu.memory_space<vmem>>, %arg6: memref<1x16xf32, #tpu.memory_space<vmem>>, %arg7: memref<1x16xf32, #tpu.memory_space<vmem>>) attributes {dimension_semantics = [#tpu.dimension_semantics<arbitrary>], iteration_bounds = array<i64: 1>, scalar_prefetch = 0 : i64, scratch_operands = 2 : i64, tpu.core_type = #tpu.core_type<tc>, window_params = [{transform_indices = @transform_0, window_bounds = array<i64: 512, 16>}, {pipeline_mode = #tpu.pipeline_mode<synchronous>, transform_indices = @transform_1, window_bounds = array<i64: 1, 16>}, {pipeline_mode = #tpu.pipeline_mode<synchronous>, transform_indices = @transform_2, window_bounds = array<i64: 1, 16>}, {pipeline_mode = #tpu.pipeline_mode<synchronous>, transform_indices = @transform_3, window_bounds = array<i64: 1, 16>}, {pipeline_mode = #tpu.pipeline_mode<synchronous>, transform_indices = @transform_4, window_bounds = array<i64: 1, 16>}]} {
    %c0_i32 = arith.constant 0 : i32
    %0 = arith.cmpi eq, %arg0, %c0_i32 : i32
    %1 = arith.extui %0 : i1 to i32
    %c0_i32_0 = arith.constant 0 : i32
    %2 = arith.cmpi ne, %1, %c0_i32_0 : i32
    scf.if %2 {
      %cst_15 = arith.constant 0.000000e+00 : f32
      %28 = vector.broadcast %cst_15 : f32 to vector<1x16xf32>
      %c0_16 = arith.constant 0 : index
      %c0_17 = arith.constant 0 : index
      %29 = vector.load %arg6[%c0_16, %c0_17] : memref<1x16xf32, #tpu.memory_space<vmem>>, vector<1x16xf32>
      tpu.vector_store %arg6[%c0_16, %c0_17], %28 {strides = array<i32>} : memref<1x16xf32, #tpu.memory_space<vmem>>, vector<1x16xf32>,
      %cst_18 = arith.constant 0.000000e+00 : f32
      %30 = vector.broadcast %cst_18 : f32 to vector<1x16xf32>
      %c0_19 = arith.constant 0 : index
      %c0_20 = arith.constant 0 : index
      %31 = vector.load %arg7[%c0_19, %c0_20] : memref<1x16xf32, #tpu.memory_space<vmem>>, vector<1x16xf32>
      tpu.vector_store %arg7[%c0_19, %c0_20], %30 {strides = array<i32>} : memref<1x16xf32, #tpu.memory_space<vmem>>, vector<1x16xf32>,
    } else {
    }
    %c0 = arith.constant 0 : index
    %c0_1 = arith.constant 0 : index
    %3 = vector.load %arg1[%c0, %c0_1] : memref<512x16xf32, #tpu.memory_space<vmem>>, vector<512x16xf32>
    %4 = tpu.iota {dimensions = array<i32: 0>} : vector<512x1xi32>
    %c512_i32 = arith.constant 512 : i32
    %5 = arith.muli %arg0, %c512_i32 : i32
    %6 = vector.broadcast %5 : i32 to vector<512x1xi32>
    %7 = arith.addi %4, %6 : vector<512x1xi32>
    %c512_i32_2 = arith.constant 512 : i32
    %8 = vector.broadcast %c512_i32_2 : i32 to vector<512x1xi32>
    %9 = arith.cmpi slt, %7, %8 : vector<512x1xi32>
    %cst = arith.constant 0.000000e+00 : f32
    %10 = vector.shape_cast %9 : vector<512x1xi1> to vector<512x1xi1>
    %11 = vector.broadcast %10 : vector<512x1xi1> to vector<512x16xi1>
    %12 = vector.broadcast %cst : f32 to vector<512x16xf32>
    %13 = arith.select %11, %3, %12 : vector<512x16xi1>, vector<512x16xf32>
    %c0_3 = arith.constant 0 : index
    %c0_4 = arith.constant 0 : index
    %14 = vector.load %arg6[%c0_3, %c0_4] : memref<1x16xf32, #tpu.memory_space<vmem>>, vector<1x16xf32>
    %cst_5 = arith.constant dense<0.000000e+00> : vector<16xf32>
    %15 = vector.multi_reduction <add>, %13, %cst_5 [0] : vector<512x16xf32> to vector<16xf32>
    %16 = vector.shape_cast %15 : vector<16xf32> to vector<1x16xf32>
    %17 = arith.addf %14, %16 : vector<1x16xf32>
    %c0_6 = arith.constant 0 : index
    %c0_7 = arith.constant 0 : index
    %18 = vector.load %arg6[%c0_6, %c0_7] : memref<1x16xf32, #tpu.memory_space<vmem>>, vector<1x16xf32>
    tpu.vector_store %arg6[%c0_6, %c0_7], %17 {strides = array<i32>} : memref<1x16xf32, #tpu.memory_space<vmem>>, vector<1x16xf32>,
    %c0_8 = arith.constant 0 : index
    %c0_9 = arith.constant 0 : index
    %19 = vector.load %arg7[%c0_8, %c0_9] : memref<1x16xf32, #tpu.memory_space<vmem>>, vector<1x16xf32>
    %20 = arith.mulf %13, %13 : vector<512x16xf32>
    %cst_10 = arith.constant dense<0.000000e+00> : vector<16xf32>
    %21 = vector.multi_reduction <add>, %20, %cst_10 [0] : vector<512x16xf32> to vector<16xf32>
    %22 = vector.shape_cast %21 : vector<16xf32> to vector<1x16xf32>
    %23 = arith.addf %19, %22 : vector<1x16xf32>
    %c0_11 = arith.constant 0 : index
    %c0_12 = arith.constant 0 : index
    %24 = vector.load %arg7[%c0_11, %c0_12] : memref<1x16xf32, #tpu.memory_space<vmem>>, vector<1x16xf32>
    tpu.vector_store %arg7[%c0_11, %c0_12], %23 {strides = array<i32>} : memref<1x16xf32, #tpu.memory_space<vmem>>, vector<1x16xf32>,
    %c0_i32_13 = arith.constant 0 : i32
    %25 = arith.cmpi eq, %arg0, %c0_i32_13 : i32
    %26 = arith.extui %25 : i1 to i32
    %c0_i32_14 = arith.constant 0 : i32
    %27 = arith.cmpi ne, %26, %c0_i32_14 : i32
    scf.if %27 {
      %c0_15 = arith.constant 0 : index
      %c0_16 = arith.constant 0 : index
      %28 = vector.load %arg6[%c0_15, %c0_16] : memref<1x16xf32, #tpu.memory_space<vmem>>, vector<1x16xf32>
      %cst_17 = arith.constant 0.001953125 : f32
      %29 = vector.broadcast %cst_17 : f32 to vector<1x16xf32>
      %30 = arith.mulf %28, %29 : vector<1x16xf32>
      %c0_18 = arith.constant 0 : index
      %c0_19 = arith.constant 0 : index
      %31 = vector.load %arg7[%c0_18, %c0_19] : memref<1x16xf32, #tpu.memory_space<vmem>>, vector<1x16xf32>
      %cst_20 = arith.constant 0.001953125 : f32
      %32 = vector.broadcast %cst_20 : f32 to vector<1x16xf32>
      %33 = arith.mulf %31, %32 : vector<1x16xf32>
      %34 = arith.mulf %30, %30 : vector<1x16xf32>
      %35 = arith.subf %33, %34 : vector<1x16xf32>
      %cst_21 = arith.constant 0.000000e+00 : f32
      %36 = vector.broadcast %cst_21 : f32 to vector<1x16xf32>
      %37 = arith.maximumf %35, %36 : vector<1x16xf32>
      %c0_22 = arith.constant 0 : index
      %c0_23 = arith.constant 0 : index
      %38 = vector.load %arg2[%c0_22, %c0_23] : memref<1x16xf32, #tpu.memory_space<vmem>>, vector<1x16xf32>
      %cst_24 = arith.constant 9.99999974E-6 : f32
      %39 = vector.broadcast %cst_24 : f32 to vector<1x16xf32>
      %40 = arith.addf %37, %39 : vector<1x16xf32>
      %41 = math.rsqrt %40 : vector<1x16xf32>
      %42 = arith.mulf %38, %41 : vector<1x16xf32>
      %c0_25 = arith.constant 0 : index
      %c0_26 = arith.constant 0 : index
      %43 = vector.load %arg4[%c0_25, %c0_26] : memref<1x16xf32, #tpu.memory_space<vmem>>, vector<1x16xf32>
      tpu.vector_store %arg4[%c0_25, %c0_26], %42 {strides = array<i32>} : memref<1x16xf32, #tpu.memory_space<vmem>>, vector<1x16xf32>,
      %c0_27 = arith.constant 0 : index
      %c0_28 = arith.constant 0 : index
      %44 = vector.load %arg3[%c0_27, %c0_28] : memref<1x16xf32, #tpu.memory_space<vmem>>, vector<1x16xf32>
      %45 = arith.mulf %30, %42 : vector<1x16xf32>
      %46 = arith.subf %44, %45 : vector<1x16xf32>
      %c0_29 = arith.constant 0 : index
      %c0_30 = arith.constant 0 : index
      %47 = vector.load %arg5[%c0_29, %c0_30] : memref<1x16xf32, #tpu.memory_space<vmem>>, vector<1x16xf32>
      tpu.vector_store %arg5[%c0_29, %c0_30], %46 {strides = array<i32>} : memref<1x16xf32, #tpu.memory_space<vmem>>, vector<1x16xf32>,
    } else {
    }
    return
  }
  func.func @transform_0(%arg0: i32) -> (i32, i32) {
    %c0_i32 = arith.constant 0 : i32
    %c0_i32_0 = arith.constant 0 : i32
    return %arg0, %c0_i32 : i32, i32
  }
  func.func @transform_1(%arg0: i32) -> (i32, i32) {
    %c0_i32 = arith.constant 0 : i32
    %c0_i32_0 = arith.constant 0 : i32
    %c0_i32_1 = arith.constant 0 : i32
    return %c0_i32, %c0_i32_0 : i32, i32
  }
  func.func @transform_2(%arg0: i32) -> (i32, i32) {
    %c0_i32 = arith.constant 0 : i32
    %c0_i32_0 = arith.constant 0 : i32
    %c0_i32_1 = arith.constant 0 : i32
    return %c0_i32, %c0_i32_0 : i32, i32
  }
  func.func @transform_3(%arg0: i32) -> (i32, i32) {
    %c0_i32 = arith.constant 0 : i32
    %c0_i32_0 = arith.constant 0 : i32
    %c0_i32_1 = arith.constant 0 : i32
    return %c0_i32, %c0_i32_0 : i32, i32
  }
  func.func @transform_4(%arg0: i32) -> (i32, i32) {
    %c0_i32 = arith.constant 0 : i32
    %c0_i32_0 = arith.constant 0 : i32
    %c0_i32_1 = arith.constant 0 : i32
    return %c0_i32, %c0_i32_0 : i32, i32
  }
}

module attributes {stable_mosaic.version = 11 : i64} {
  func.func @_fused_bn_relu_conv_kernel(%arg0: i32, %arg1: memref<1x16xf32, #tpu.memory_space<vmem>>, %arg2: memref<1x16xf32, #tpu.memory_space<vmem>>, %arg3: memref<1x16x16x16xf32, #tpu.memory_space<vmem>>, %arg4: memref<144x128xbf16, #tpu.memory_space<vmem>>, %arg5: memref<1x256x128xf32, #tpu.memory_space<vmem>>) attributes {dimension_semantics = [#tpu.dimension_semantics<parallel>], iteration_bounds = array<i64: 2>, scalar_prefetch = 0 : i64, scratch_operands = 0 : i64, tpu.core_type = #tpu.core_type<tc>, window_params = [{pipeline_mode = #tpu.pipeline_mode<synchronous>, transform_indices = @transform_0, window_bounds = array<i64: 1, 16>}, {pipeline_mode = #tpu.pipeline_mode<synchronous>, transform_indices = @transform_1, window_bounds = array<i64: 1, 16>}, {transform_indices = @transform_2, window_bounds = array<i64: 1, 16, 16, 16>}, {pipeline_mode = #tpu.pipeline_mode<synchronous>, transform_indices = @transform_3, window_bounds = array<i64: 144, 128>}, {transform_indices = @transform_4, window_bounds = array<i64: 1, 256, 128>}]} {
    %c0 = arith.constant 0 : index
    %c0_0 = arith.constant 0 : index
    %c0_1 = arith.constant 0 : index
    %c0_2 = arith.constant 0 : index
    %0 = vector.load %arg3[%c0, %c0_0, %c0_1, %c0_2] : memref<1x16x16x16xf32, #tpu.memory_space<vmem>>, vector<1x16x16x16xf32>
    %1 = vector.shape_cast %0 : vector<1x16x16x16xf32> to vector<16x16x16xf32>
    %c0_3 = arith.constant 0 : index
    %c0_4 = arith.constant 0 : index
    %2 = vector.load %arg1[%c0_3, %c0_4] : memref<1x16xf32, #tpu.memory_space<vmem>>, vector<1x16xf32>
    %3 = vector.shape_cast %2 : vector<1x16xf32> to vector<1x1x16xf32>
    %4 = vector.broadcast %3 : vector<1x1x16xf32> to vector<16x16x16xf32>
    %5 = arith.mulf %1, %4 : vector<16x16x16xf32>
    %c0_5 = arith.constant 0 : index
    %c0_6 = arith.constant 0 : index
    %6 = vector.load %arg2[%c0_5, %c0_6] : memref<1x16xf32, #tpu.memory_space<vmem>>, vector<1x16xf32>
    %7 = vector.shape_cast %6 : vector<1x16xf32> to vector<1x1x16xf32>
    %8 = vector.broadcast %7 : vector<1x1x16xf32> to vector<16x16x16xf32>
    %9 = arith.addf %5, %8 : vector<16x16x16xf32>
    %cst = arith.constant 0.000000e+00 : f32
    %10 = vector.broadcast %cst : f32 to vector<16x16x16xf32>
    %11 = arith.maximumf %9, %10 : vector<16x16x16xf32>
    %12 = arith.truncf %11 : vector<16x16x16xf32> to vector<16x16x16xbf16>
    %cst_7 = arith.constant 0.000000e+00 : bf16
    %13 = vector.broadcast %cst_7 : bf16 to vector<1x16x16xbf16>
    %14 = tpu.concatenate %13, %12, %13 in 0 : vector<1x16x16xbf16>, vector<16x16x16xbf16>, vector<1x16x16xbf16> -> vector<18x16x16xbf16>
    %cst_8 = arith.constant 0.000000e+00 : bf16
    %15 = vector.broadcast %cst_8 : bf16 to vector<18x1x16xbf16>
    %16 = tpu.concatenate %15, %14, %15 in 1 : vector<18x1x16xbf16>, vector<18x16x16xbf16>, vector<18x1x16xbf16> -> vector<18x18x16xbf16>
    %17 = vector.extract_strided_slice %16 {offsets = [0, 0, 0], sizes = [16, 16, 16], strides = [1, 1, 1]} : vector<18x18x16xbf16> to vector<16x16x16xbf16>
    %18 = vector.extract_strided_slice %16 {offsets = [0, 1, 0], sizes = [16, 16, 16], strides = [1, 1, 1]} : vector<18x18x16xbf16> to vector<16x16x16xbf16>
    %19 = vector.extract_strided_slice %16 {offsets = [0, 2, 0], sizes = [16, 16, 16], strides = [1, 1, 1]} : vector<18x18x16xbf16> to vector<16x16x16xbf16>
    %20 = vector.extract_strided_slice %16 {offsets = [1, 0, 0], sizes = [16, 16, 16], strides = [1, 1, 1]} : vector<18x18x16xbf16> to vector<16x16x16xbf16>
    %21 = vector.extract_strided_slice %16 {offsets = [1, 1, 0], sizes = [16, 16, 16], strides = [1, 1, 1]} : vector<18x18x16xbf16> to vector<16x16x16xbf16>
    %22 = vector.extract_strided_slice %16 {offsets = [1, 2, 0], sizes = [16, 16, 16], strides = [1, 1, 1]} : vector<18x18x16xbf16> to vector<16x16x16xbf16>
    %23 = vector.extract_strided_slice %16 {offsets = [2, 0, 0], sizes = [16, 16, 16], strides = [1, 1, 1]} : vector<18x18x16xbf16> to vector<16x16x16xbf16>
    %24 = vector.extract_strided_slice %16 {offsets = [2, 1, 0], sizes = [16, 16, 16], strides = [1, 1, 1]} : vector<18x18x16xbf16> to vector<16x16x16xbf16>
    %25 = vector.extract_strided_slice %16 {offsets = [2, 2, 0], sizes = [16, 16, 16], strides = [1, 1, 1]} : vector<18x18x16xbf16> to vector<16x16x16xbf16>
    %26 = tpu.concatenate %17, %18, %19, %20, %21, %22, %23, %24, %25 in 2 : vector<16x16x16xbf16>, vector<16x16x16xbf16>, vector<16x16x16xbf16>, vector<16x16x16xbf16>, vector<16x16x16xbf16>, vector<16x16x16xbf16>, vector<16x16x16xbf16>, vector<16x16x16xbf16>, vector<16x16x16xbf16> -> vector<16x16x144xbf16>
    %27 = vector.shape_cast %26 : vector<16x16x144xbf16> to vector<256x144xbf16>
    %c0_9 = arith.constant 0 : index
    %c0_10 = arith.constant 0 : index
    %28 = vector.load %arg4[%c0_9, %c0_10] : memref<144x128xbf16, #tpu.memory_space<vmem>>, vector<144x128xbf16>
    %cst_11 = arith.constant dense<0.000000e+00> : vector<256x128xf32>
    %29 = tpu.matmul %27, %28, %cst_11 {dimension_numbers = #tpu.dot_dimension_numbers<[1], [0], [0], [1], [0, 0, 1, 1], [], []>} : vector<256x144xbf16>, vector<144x128xbf16>, vector<256x128xf32> -> vector<256x128xf32>
    %c0_12 = arith.constant 0 : index
    %c0_13 = arith.constant 0 : index
    %c0_14 = arith.constant 0 : index
    %30 = vector.load %arg5[%c0_12, %c0_13, %c0_14] : memref<1x256x128xf32, #tpu.memory_space<vmem>>, vector<1x256x128xf32>
    %31 = vector.shape_cast %30 : vector<1x256x128xf32> to vector<256x128xf32>
    %32 = vector.shape_cast %29 : vector<256x128xf32> to vector<1x256x128xf32>
    tpu.vector_store %arg5[%c0_12, %c0_13, %c0_14], %32 {strides = array<i32>} : memref<1x256x128xf32, #tpu.memory_space<vmem>>, vector<1x256x128xf32>,
    return
  }
  func.func @transform_0(%arg0: i32) -> (i32, i32) {
    %c0_i32 = arith.constant 0 : i32
    %c0_i32_0 = arith.constant 0 : i32
    %c0_i32_1 = arith.constant 0 : i32
    return %c0_i32, %c0_i32_0 : i32, i32
  }
  func.func @transform_1(%arg0: i32) -> (i32, i32) {
    %c0_i32 = arith.constant 0 : i32
    %c0_i32_0 = arith.constant 0 : i32
    %c0_i32_1 = arith.constant 0 : i32
    return %c0_i32, %c0_i32_0 : i32, i32
  }
  func.func @transform_2(%arg0: i32) -> (i32, i32, i32, i32) {
    %c0_i32 = arith.constant 0 : i32
    %c0_i32_0 = arith.constant 0 : i32
    %c0_i32_1 = arith.constant 0 : i32
    %c0_i32_2 = arith.constant 0 : i32
    return %arg0, %c0_i32, %c0_i32_0, %c0_i32_1 : i32, i32, i32, i32
  }
  func.func @transform_3(%arg0: i32) -> (i32, i32) {
    %c0_i32 = arith.constant 0 : i32
    %c0_i32_0 = arith.constant 0 : i32
    %c0_i32_1 = arith.constant 0 : i32
    return %c0_i32, %c0_i32_0 : i32, i32
  }
  func.func @transform_4(%arg0: i32) -> (i32, i32, i32) {
    %c0_i32 = arith.constant 0 : i32
    %c0_i32_0 = arith.constant 0 : i32
    %c0_i32_1 = arith.constant 0 : i32
    return %arg0, %c0_i32, %c0_i32_0 : i32, i32, i32
  }
}

</mosaic_0001>

<bundles_post_ra>
// kernel: res_block_forward.2
= control target key start
LH: loop header
LB: loop body
LE: loop exit
PB: predicated region body
PF: predicated region fallthrough
CT: control target
= control target key end

     0   :  { %vm20_vm0 = vcmask 122880   ;;  %vm475_vm1 = vcmask 130048   ;;  %v842_v0 = vmov 0.0   ;;  %s1740_s0 = inlined_call_operand.vmem [shape: f32[512,16], index: 0, kind: input, shape index: {}]   ;;  %s1741_s1 = inlined_call_operand.vmem [shape: f32[1,16], index: 1, kind: input, shape index: {}]   ;;  %s1742_s2 = inlined_call_operand.vmem [shape: f32[1,16], index: 2, kind: input, shape index: {}]   ;;  %s1743_s3 = inlined_call_operand.vmem [shape: f32[1,16], index: 3, kind: output, shape index: {0}]   ;;  %s1744_s4 = inlined_call_operand.vmem [shape: f32[1,16], index: 4, kind: output, shape index: {1}]  }
   0x1   :  { %21 = vst.msk [vmem:[#allocation2] sm:$0x1] %vm20_vm0, %v842_v0  ;;  %22 = vst.msk [vmem:[#allocation3] sm:$0x1] %vm20_vm0, %v842_v0  ;;  %v873_v1 = vld [vmem:[%s1740_s0] sm:$0xff]  ;;  %v878_v2 = vld [vmem:[%s1740_s0 + $0x8] sm:$0xff] }
   0x2   :  { %v883_v3 = vld [vmem:[%s1740_s0 + $0x10] sm:$0xff]  ;;  %v888_v4 = vld [vmem:[%s1740_s0 + $0x18] sm:$0xff]  ;;  %v476_v5 = vsel %vm475_vm1, %v873_v1, 0.0  ;;  %v477_v6 = vsel %vm475_vm1, %v878_v2, 0.0  ;;  %v899_v8 = vld [vmem:[%s1740_s0 + $0x20] sm:$0xff] }
   0x3   :  { %v479_v7 = vsel %vm475_vm1, %v883_v3, 0.0  ;;  %v478_v9 = vadd.f32 %v477_v6, %v476_v5  ;;  %v481_v10 = vsel %vm475_vm1, %v888_v4, 0.0  ;;  %v906_v11 = vld [vmem:[%s1740_s0 + $0x28] sm:$0xff]  ;;  %v483_v13 = vsel %vm475_vm1, %v899_v8, 0.0  ;;  %v913_v14 = vld [vmem:[%s1740_s0 + $0x30] sm:$0xff]  ;;  %v918_v16 = vld [vmem:[%s1740_s0 + $0x38] sm:$0xff] }
   0x4   :  { %v923_v17 = vld [vmem:[%s1740_s0 + $0x40] sm:$0xff]  ;;  %v485_v18 = vsel %vm475_vm1, %v906_v11, 0.0  ;;  %v930_v19 = vld [vmem:[%s1740_s0 + $0x48] sm:$0xff]  ;;  %v935_v20 = vld [vmem:[%s1740_s0 + $0x50] sm:$0xff]  ;;  %v487_v23 = vsel %vm475_vm1, %v913_v14, 0.0  ;;  %v489_v25 = vsel %vm475_vm1, %v918_v16, 0.0 }
   0x5   :  { %v480_v12 = vadd.f32 %v479_v7, %v478_v9  ;;  %v940_v21 = vld [vmem:[%s1740_s0 + $0x58] sm:$0xff]  ;;  %v491_v26 = vsel %vm475_vm1, %v923_v17, 0.0  ;;  %v951_v27 = vld [vmem:[%s1740_s0 + $0x108] sm:$0xff]  ;;  %v956_v28 = vld [vmem:[%s1740_s0 + $0x110] sm:$0xff]  ;;  %v493_v30 = vsel %vm475_vm1, %v930_v19, 0.0  ;;  %v495_v31 = vsel %vm475_vm1, %v935_v20, 0.0 }
   0x6   :  { %v961_v29 = vld [vmem:[%s1740_s0 + $0x118] sm:$0xff]  ;;  %v969_v32 = vsel %vm475_vm1, %v940_v21, 0.0  ;;  %v974_v33 = vld [vmem:[%s1740_s0 + $0x120] sm:$0xff]  ;;  %v979_v34 = vld [vmem:[%s1740_s0 + $0x128] sm:$0xff]  ;;  %v988_v37 = vsel %vm475_vm1, %v951_v27, 0.0  ;;  %v992_v38 = vsel %vm475_vm1, %v956_v28, 0.0 }
   0x7   :  { %v482_v15 = vadd.f32 %v481_v10, %v480_v12  ;;  %v984_v35 = vld [vmem:[%s1740_s0 + $0x130] sm:$0xff]  ;;  %1767 = vst [vmem:[#allocation4_spill] sm:$0xff] %v988_v37  ;;  %1768 = vst [vmem:[#allocation5_spill] sm:$0xff] %v992_v38  ;;  %v996_v39 = vsel %vm475_vm1, %v961_v29, 0.0  ;;  %v1001_v40 = vld [vmem:[%s1740_s0 + $0x138] sm:$0xff]  ;;  %v1015_v43 = vsel %vm475_vm1, %v974_v33, 0.0 }
   0x8   :  { %1769 = vst [vmem:[#allocation6_spill] sm:$0xff] %v996_v39  ;;  %v1006_v41 = vld [vmem:[%s1740_s0 + $0x140] sm:$0xff]  ;;  %v1011_v42 = vld [vmem:[%s1740_s0 + $0x148] sm:$0xff]  ;;  %1770 = vst [vmem:[#allocation7_spill] sm:$0xff] %v1015_v43  ;;  %v1019_v44 = vsel %vm475_vm1, %v979_v34, 0.0  ;;  %v1023_v45 = vsel %vm475_vm1, %v984_v35, 0.0 }
   0x9   :  { %v484_v22 = vadd.f32 %v483_v13, %v482_v15  ;;  %1771 = vst [vmem:[#allocation8_spill] sm:$0xff] %v1019_v44  ;;  %1772 = vst [vmem:[#allocation9_spill] sm:$0xff] %v1023_v45  ;;  %v1028_v46 = vld [vmem:[%s1740_s0 + $0x150] sm:$0xff]  ;;  %v1033_v47 = vld [vmem:[%s1740_s0 + $0x158] sm:$0xff]  ;;  %v1042_v50 = vsel %vm475_vm1, %v1001_v40, 0.0  ;;  %v1046_v51 = vsel %vm475_vm1, %v1006_v41, 0.0 }
   0xa   :  { %v1038_v48 = vld [vmem:[%s1740_s0 + $0x160] sm:$0xff]  ;;  %1773 = vst [vmem:[#allocation10_spill] sm:$0xff] %v1042_v50  ;;  %1774 = vst [vmem:[#allocation11_spill] sm:$0xff] %v1046_v51  ;;  %v1050_v52 = vsel %vm475_vm1, %v1011_v42, 0.0  ;;  %v1055_v53 = vld [vmem:[%s1740_s0 + $0x168] sm:$0xff]  ;;  %v1069_v56 = vsel %vm475_vm1, %v1028_v46, 0.0 }
   0xb   :  { %v486_v24 = vadd.f32 %v485_v18, %v484_v22  ;;  %1775 = vst [vmem:[#allocation12_spill] sm:$0xff] %v1050_v52  ;;  %v1060_v54 = vld [vmem:[%s1740_s0 + $0x170] sm:$0xff]  ;;  %v1065_v55 = vld [vmem:[%s1740_s0 + $0x178] sm:$0xff]  ;;  %1776 = vst [vmem:[#allocation13_spill] sm:$0xff] %v1069_v56  ;;  %v1073_v57 = vsel %vm475_vm1, %v1033_v47, 0.0  ;;  %v1077_v58 = vsel %vm475_vm1, %v1038_v48, 0.0 }
   0xc   :  { %1777 = vst [vmem:[#allocation14_spill] sm:$0xff] %v1073_v57  ;;  %1778 = vst [vmem:[#allocation15_spill] sm:$0xff] %v1077_v58  ;;  %v1082_v59 = vld [vmem:[%s1740_s0 + $0x60] sm:$0xff]  ;;  %v1092_v61 = vld [vmem:[%s1740_s0 + $0x188] sm:$0xff]  ;;  %v1101_v0 = vsel %vm475_vm1, %v1055_v53, 0.0  ;;  %v1105_v5 = vsel %vm475_vm1, %v1060_v54, 0.0 }
   0xd   :  { %v488_v36 = vadd.f32 %v487_v23, %v486_v24  ;;  %v1087_v60 = vld [vmem:[%s1740_s0 + $0x180] sm:$0xff]  ;;  %v1097_v62 = vld [vmem:[%s1740_s0 + $0x190] sm:$0xff]  ;;  %1779 = vst [vmem:[#allocation16_spill] sm:$0xff] %v1101_v0  ;;  %1780 = vst [vmem:[#allocation17_spill] sm:$0xff] %v1105_v5  ;;  %v1109_v6 = vsel %vm475_vm1, %v1065_v55, 0.0  ;;  %v1132_v13 = vsel %vm475_vm1, %v1092_v61, 0.0 }
   0xe   :  { %1781 = vst [vmem:[#allocation18_spill] sm:$0xff] %v1109_v6  ;;  %v1114_v7 = vld [vmem:[%s1740_s0 + $0x198] sm:$0xff]  ;;  %v1119_v9 = vld [vmem:[%s1740_s0 + $0x1a0] sm:$0xff]  ;;  %v1124_v10 = vld [vmem:[%s1740_s0 + $0x1a8] sm:$0xff]  ;;  %v1128_v12 = vsel %vm475_vm1, %v1087_v60, 0.0  ;;  %v1136_v15 = vsel %vm475_vm1, %v1097_v62, 0.0 }
   0xf   :  { %v490_v49 = vadd.f32 %v489_v25, %v488_v36  ;;  %1782 = vst [vmem:[#allocation19_spill] sm:$0xff] %v1128_v12  ;;  %1783 = vst [vmem:[#allocation20_spill] sm:$0xff] %v1132_v13  ;;  %v1141_v18 = vld [vmem:[%s1740_s0 + $0x68] sm:$0xff]  ;;  %v1146_v22 = vld [vmem:[%s1740_s0 + $0x1b0] sm:$0xff]  ;;  %v1164_v36 = vsel %vm475_vm1, %v1119_v9, 0.0 }
  0x10   :  { %1784 = vst [vmem:[#allocation21_spill] sm:$0xff] %v1136_v15  ;;  %v1151_v23 = vld [vmem:[%s1740_s0 + $0x1b8] sm:$0xff]  ;;  %v1156_v24 = vld [vmem:[%s1740_s0 + $0x1c0] sm:$0xff]  ;;  %1786 = vst [vmem:[#allocation23_spill] sm:$0xff] %v1164_v36  ;;  %v1187_v36 = vsel %vm475_vm1, %v1146_v22, 0.0 }
  0x11   :  { %v492_v63 = vadd.f32 %v491_v26, %v490_v49  ;;  %v1160_v26 = vsel %vm475_vm1, %v1114_v7, 0.0  ;;  %v1168_v49 = vsel %vm475_vm1, %v1124_v10, 0.0  ;;  %v1173_v15 = vld [vmem:[%s1740_s0 + $0x1c8] sm:$0xff]  ;;  %1790 = vst [vmem:[#allocation27_spill] sm:$0xff] %v1187_v36  ;;  %v1200_v13 = vld [vmem:[%s1740_s0 + $0x1e0] sm:$0xff]  ;;  %v1210_v36 = vld [vmem:[%s1740_s0 + $0x1f0] sm:$0xff] }
  0x12   :  { %1785 = vst [vmem:[#allocation22_spill] sm:$0xff] %v1160_v26  ;;  %1787 = vst [vmem:[#allocation24_spill] sm:$0xff] %v1168_v49  ;;  %v1191_v49 = vsel %vm475_vm1, %v1151_v23, 0.0  ;;  %v1195_v26 = vsel %vm475_vm1, %v1156_v24, 0.0  ;;  %v1205_v12 = vld [vmem:[%s1740_s0 + $0x1e8] sm:$0xff]  ;;  %v1214_v6 = vsel %vm475_vm1, %v1173_v15, 0.0 }
  0x13   :  { %v494_v25 = vadd.f32 %v493_v30, %v492_v63  ;;  %v1178_v30 = vld [vmem:[%s1740_s0 + $0x1d0] sm:$0xff]  ;;  %v1183_v63 = vld [vmem:[%s1740_s0 + $0x1d8] sm:$0xff]  ;;  %1791 = vst [vmem:[#allocation28_spill] sm:$0xff] %v1191_v49  ;;  %1792 = vst [vmem:[#allocation29_spill] sm:$0xff] %v1195_v26 }
  0x14   :  { %1788 = vst [vmem:[#allocation25_spill] sm:$0xff] %v1178_v30  ;;  %1789 = vst [vmem:[#allocation26_spill] sm:$0xff] %v1183_v63  ;;  %v1218_v26 = vsel %vm475_vm1, %v1178_v30, 0.0  ;;  %v1222_v5 = vsel %vm475_vm1, %v1183_v63, 0.0  ;;  %v1227_v0 = vld [vmem:[%s1740_s0 + $0x1f8] sm:$0xff]  ;;  %v1281_v56 = vld [vmem:[%s1740_s0 + $0xa0] sm:$0xff] }
  0x15   :  { %1793 = vst [vmem:[#allocation30_spill] sm:$0xff] %v1200_v13  ;;  %1794 = vst [vmem:[#allocation31_spill] sm:$0xff] %v1205_v12  ;;  %v496_v49 = vadd.f32 %v495_v31, %v494_v25  ;;  %v499_v31 = vsel %vm475_vm1, %v1082_v59, 0.0  ;;  %v1233_v25 = vsel %vm475_vm1, %v1200_v13, 0.0  ;;  %v1249_v57 = vsel %vm475_vm1, %v1227_v0, 0.0  ;;  %v1286_v51 = vld [vmem:[%s1740_s0 + $0xa8] sm:$0xff] }
  0x16   :  { %1795 = vst [vmem:[#allocation32_spill] sm:$0xff] %v1210_v36  ;;  %1796 = vst [vmem:[#allocation33_spill] sm:$0xff] %v1214_v6  ;;  %v1237_v6 = vsel %vm475_vm1, %v1205_v12, 0.0  ;;  %v1291_v50 = vld [vmem:[%s1740_s0 + $0xb0] sm:$0xff]  ;;  %v1296_v45 = vld [vmem:[%s1740_s0 + $0xb8] sm:$0xff] }
  0x17   :  { %1797 = vst [vmem:[#allocation34_spill] sm:$0xff] %v1218_v26  ;;  %1798 = vst [vmem:[#allocation35_spill] sm:$0xff] %v1222_v5  ;;  %v1241_v26 = vsel %vm475_vm1, %v1210_v36, 0.0  ;;  %v37_v5 = vld [vmem:[%s1740_s0 + $0x70] sm:$0xff]  ;;  %v498_v58 = vadd.f32 %v969_v32, %v496_v49  ;;  %v501_v32 = vsel %vm475_vm1, %v1141_v18, 0.0  ;;  %v1306_v43 = vld [vmem:[%s1740_s0 + $0xc0] sm:$0xff] }
  0x18   :  { %1799 = vst [vmem:[#allocation36_spill] sm:$0xff] %v1227_v0  ;;  %1800 = vst [vmem:[#allocation37_spill] sm:$0xff] %v1233_v25  ;;  %v1254_v25 = vld [vmem:[%s1740_s0 + $0x78] sm:$0xff]  ;;  %v1271_v49 = vld [vmem:[%s1740_s0 + $0x90] sm:$0xff]  ;;  %v503_v44 = vsel %vm475_vm1, %v37_v5, 0.0  ;;  %v615_v0 = vmul.f32 %v883_v3, %v883_v3  ;;  %v515_v3 = vsel %vm475_vm1, %v1281_v56, 0.0 }
  0x19   :  { %1801 = vst [vmem:[#allocation38_spill] sm:$0xff] %v1237_v6  ;;  %1802 = vst [vmem:[#allocation39_spill] sm:$0xff] %v1241_v26  ;;  %v1259_v6 = vld [vmem:[%s1740_s0 + $0x80] sm:$0xff]  ;;  %v1264_v26 = vld [vmem:[%s1740_s0 + $0x88] sm:$0xff]  ;;  %v500_v52 = vadd.f32 %v499_v31, %v498_v58  ;;  %v613_v58 = vmul.f32 %v873_v1, %v873_v1  ;;  %v614_v31 = vmul.f32 %v878_v2, %v878_v2  ;;  %v505_v1 = vsel %vm475_vm1, %v1254_v25, 0.0 }
  0x1a   :  { %1803 = vst [vmem:[#allocation40_spill] sm:$0xff] %v1249_v57  ;;  %1804 = vst [vmem:[#allocation41_spill] sm:$0xff] %v1254_v25  ;;  %v1276_v57 = vld [vmem:[%s1740_s0 + $0x98] sm:$0xff]  ;;  %v1311_v39 = vld [vmem:[%s1740_s0 + $0xc8] sm:$0xff]  ;;  %v507_v2 = vsel %vm475_vm1, %v1259_v6, 0.0  ;;  %v1360_v63 = vsel %vm475_vm1, %v1296_v45, 0.0 }
  0x1b   :  { %1805 = vst [vmem:[#allocation42_spill] sm:$0xff] %v1259_v6  ;;  %1806 = vst [vmem:[#allocation43_spill] sm:$0xff] %v1264_v26  ;;  %v1316_v38 = vld [vmem:[%s1740_s0 + $0xd0] sm:$0xff]  ;;  %v502_v37 = vadd.f32 %v501_v32, %v500_v52  ;;  %v1327_v36 = vld [vmem:[%s1740_s0 + $0xd8] sm:$0xff]  ;;  %v509_v52 = vsel %vm475_vm1, %v1264_v26, 0.0  ;;  %v511_v32 = vsel %vm475_vm1, %v1271_v49, 0.0 }
  0x1c   :  { %1807 = vst [vmem:[#allocation44_spill] sm:$0xff] %v1271_v49  ;;  %1808 = vst [vmem:[#allocation45_spill] sm:$0xff] %v1276_v57  ;;  %v1332_v12 = vld [vmem:[%s1740_s0 + $0xe0] sm:$0xff]  ;;  %v513_v6 = vsel %vm475_vm1, %v1276_v57, 0.0  ;;  %v1345_v25 = vld [vmem:[%s1740_s0 + $0xe8] sm:$0xff]  ;;  %v517_v49 = vsel %vm475_vm1, %v1286_v51, 0.0 }
  0x1d   :  { %1809 = vst [vmem:[#allocation46_spill] sm:$0xff] %v1281_v56  ;;  %1810 = vst [vmem:[#allocation47_spill] sm:$0xff] %v1286_v51  ;;  %v1350_v13 = vld [vmem:[%s1740_s0 + $0xf0] sm:$0xff]  ;;  %v504_v26 = vadd.f32 %v503_v44, %v502_v37  ;;  %v519_v57 = vsel %vm475_vm1, %v1291_v50, 0.0  ;;  %v616_v56 = vmul.f32 %v888_v4, %v888_v4  ;;  %v1364_v30 = vsel %vm475_vm1, %v1306_v43, 0.0 }
  0x1e   :  { %1811 = vst [vmem:[#allocation48_spill] sm:$0xff] %v1291_v50  ;;  %1812 = vst [vmem:[#allocation49_spill] sm:$0xff] %v1296_v45  ;;  %v1368_v37 = vsel %vm475_vm1, %v1311_v39, 0.0  ;;  %v1372_v44 = vsel %vm475_vm1, %v1316_v38, 0.0  ;;  %v1376_v4 = vsel %vm475_vm1, %v1327_v36, 0.0  ;;  %v1380_v45 = vsel %vm475_vm1, %v1332_v12, 0.0 }
  0x1f   :  { %1813 = vst [vmem:[#allocation50_spill] sm:$0xff] %v1306_v43  ;;  %1814 = vst [vmem:[#allocation51_spill] sm:$0xff] %v1311_v39  ;;  %v506_v50 = vadd.f32 %v505_v1, %v504_v26  ;;  %v617_v43 = vmul.f32 %v899_v8, %v899_v8  ;;  %v1386_v39 = vsel %vm475_vm1, %v1345_v25, 0.0  ;;  %v618_v26 = vmul.f32 %v906_v11, %v906_v11 }
  0x20   :  { %1815 = vst [vmem:[#allocation52_spill] sm:$0xff] %v1316_v38  ;;  %1816 = vst [vmem:[#allocation53_spill] sm:$0xff] %v1327_v36  ;;  %v1390_v38 = vsel %vm475_vm1, %v1350_v13, 0.0  ;;  %v619_v1 = vmul.f32 %v913_v14, %v913_v14  ;;  %v621_v8 = vmul.f32 %v923_v17, %v923_v17  ;;  %v624_v51 = vmul.f32 %v940_v21, %v940_v21 }
  0x21   :  { %1817 = vst [vmem:[#allocation54_spill] sm:$0xff] %v1332_v12  ;;  %1818 = vst [vmem:[#allocation55_spill] sm:$0xff] %v1345_v25  ;;  %v508_v36 = vadd.f32 %v507_v2, %v506_v50  ;;  %v620_v12 = vmul.f32 %v918_v16, %v918_v16  ;;  %v622_v25 = vmul.f32 %v930_v19, %v930_v19 }
  0x22   :  { %1819 = vst [vmem:[#allocation56_spill] sm:$0xff] %v1350_v13  ;;  %v623_v13 = vmul.f32 %v935_v20, %v935_v20  ;;  %v625_v11 = vmul.f32 %v1082_v59, %v1082_v59  ;;  %v1410_v14 = vmul.f32 %v1141_v18, %v1141_v18  ;;  %v1412_v50 = vmul.f32 %v37_v5, %v37_v5 }
  0x23   :  { %v510_v16 = vadd.f32 %v509_v52, %v508_v36  ;;  %v646_v17 = vmul.f32 %v951_v27, %v951_v27  ;;  %v647_v19 = vmul.f32 %v956_v28, %v956_v28  ;;  %v648_v20 = vmul.f32 %v961_v29, %v961_v29 }
  0x24   :  { %v649_v21 = vmul.f32 %v974_v33, %v974_v33  ;;  %v650_v59 = vmul.f32 %v979_v34, %v979_v34  ;;  %v651_v18 = vmul.f32 %v984_v35, %v984_v35  ;;  %v652_v36 = vmul.f32 %v1001_v40, %v1001_v40 }
  0x25   :  { %v512_v5 = vadd.f32 %v511_v32, %v510_v16  ;;  %v653_v27 = vmul.f32 %v1006_v41, %v1006_v41  ;;  %v654_v28 = vmul.f32 %v1011_v42, %v1011_v42  ;;  %v655_v29 = vmul.f32 %v1028_v46, %v1028_v46 }
  0x26   :  { %v656_v33 = vmul.f32 %v1033_v47, %v1033_v47  ;;  %v677_v34 = vsel %vm475_vm1, %v613_v58, 0.0  ;;  %v678_v35 = vsel %vm475_vm1, %v614_v31, 0.0  ;;  %v657_v40 = vmul.f32 %v1038_v48, %v1038_v48 }
  0x27   :  { %v514_v2 = vadd.f32 %v513_v6, %v512_v5  ;;  %v679_v52 = vadd.f32 %v678_v35, %v677_v34  ;;  %v680_v41 = vsel %vm475_vm1, %v615_v0, 0.0  ;;  %v658_v42 = vmul.f32 %v1055_v53, %v1055_v53  ;;  %v1822_v35 = vld [vmem:[#allocation30_spill] sm:$0xff] }
  0x28   :  { %v659_v46 = vmul.f32 %v1060_v54, %v1060_v54  ;;  %v660_v47 = vmul.f32 %v1065_v55, %v1065_v55  ;;  %v682_v58 = vsel %vm475_vm1, %v616_v56, 0.0  ;;  %v661_v6 = vmul.f32 %v1087_v60, %v1087_v60 }
  0x29   :  { %v516_v32 = vadd.f32 %v515_v3, %v514_v2  ;;  %v662_v48 = vmul.f32 %v1092_v61, %v1092_v61  ;;  %v681_v31 = vadd.f32 %v680_v41, %v679_v52  ;;  %v663_v0 = vmul.f32 %v1097_v62, %v1097_v62 }
  0x2a   :  { %v664_v53 = vmul.f32 %v1114_v7, %v1114_v7  ;;  %v665_v54 = vmul.f32 %v1119_v9, %v1119_v9  ;;  %v684_v55 = vsel %vm475_vm1, %v617_v43, 0.0  ;;  %v666_v3 = vmul.f32 %v1124_v10, %v1124_v10  ;;  %v1821_v10 = vld [vmem:[#allocation26_spill] sm:$0xff] }
  0x2b   :  { %v518_v56 = vadd.f32 %v517_v49, %v516_v32  ;;  %v667_v60 = vmul.f32 %v1146_v22, %v1146_v22  ;;  %v683_v61 = vadd.f32 %v682_v58, %v681_v31  ;;  %v668_v16 = vmul.f32 %v1151_v23, %v1151_v23  ;;  %v1820_v49 = vld [vmem:[#allocation25_spill] sm:$0xff]  ;;  %v1823_v23 = vld [vmem:[#allocation31_spill] sm:$0xff] }
  0x2c   :  { %v669_v62 = vmul.f32 %v1156_v24, %v1156_v24  ;;  %v670_v7 = vmul.f32 %v1173_v15, %v1173_v15  ;;  %v686_v9 = vsel %vm475_vm1, %v618_v26, 0.0  ;;  %v671_v5 = vmul.f32 %v1820_v49, %v1820_v49  ;;  %v1824_v24 = vld [vmem:[#allocation32_spill] sm:$0xff] }
  0x2d   :  { %v520_v43 = vadd.f32 %v519_v57, %v518_v56  ;;  %v672_v34 = vmul.f32 %v1821_v10, %v1821_v10  ;;  %v685_v22 = vadd.f32 %v684_v55, %v683_v61  ;;  %v673_v2 = vmul.f32 %v1822_v35, %v1822_v35  ;;  %v1825_v26 = vld [vmem:[#allocation36_spill] sm:$0xff] }
  0x2e   :  { %v674_v52 = vmul.f32 %v1823_v23, %v1823_v23  ;;  %v675_v41 = vmul.f32 %v1824_v24, %v1824_v24  ;;  %v688_v15 = vsel %vm475_vm1, %v619_v1, 0.0  ;;  %v676_v58 = vmul.f32 %v1825_v26, %v1825_v26  ;;  %v1826_v24 = vld [vmem:[#allocation41_spill] sm:$0xff] }
  0x2f   :  { %v522_v57 = vadd.f32 %v1360_v63, %v520_v43  ;;  %v687_v32 = vadd.f32 %v686_v9, %v685_v22  ;;  %v690_v31 = vsel %vm475_vm1, %v620_v12, 0.0  ;;  %v692_v55 = vsel %vm475_vm1, %v621_v8, 0.0 }
  0x30   :  { %v694_v56 = vsel %vm475_vm1, %v622_v25, 0.0  ;;  %v696_v61 = vsel %vm475_vm1, %v623_v13, 0.0  ;;  %v698_v49 = vsel %vm475_vm1, %v624_v51, 0.0  ;;  %v700_v1 = vsel %vm475_vm1, %v625_v11, 0.0 }
  0x31   :  { %v524_v10 = vadd.f32 %v1364_v30, %v522_v57  ;;  %v689_v35 = vadd.f32 %v688_v15, %v687_v32  ;;  %v1492_v63 = vsel %vm475_vm1, %v646_v17, 0.0  ;;  %v1495_v9 = vsel %vm475_vm1, %v647_v19, 0.0 }
  0x32   :  { %v1498_v12 = vsel %vm475_vm1, %v648_v20, 0.0  ;;  %v1501_v25 = vsel %vm475_vm1, %v649_v21, 0.0  ;;  %v1504_v13 = vsel %vm475_vm1, %v650_v59, 0.0  ;;  %v1508_v8 = vsel %vm475_vm1, %v651_v18, 0.0 }
  0x33   :  { %v526_v51 = vadd.f32 %v1368_v37, %v524_v10  ;;  %v691_v30 = vadd.f32 %v690_v31, %v689_v35  ;;  %v1511_v11 = vsel %vm475_vm1, %v652_v36, 0.0  ;;  %v1514_v17 = vsel %vm475_vm1, %v653_v27, 0.0 }
  0x34   :  { %v1517_v19 = vsel %vm475_vm1, %v654_v28, 0.0  ;;  %v1520_v20 = vsel %vm475_vm1, %v655_v29, 0.0  ;;  %v1523_v21 = vsel %vm475_vm1, %v656_v33, 0.0  ;;  %v1527_v18 = vsel %vm475_vm1, %v657_v40, 0.0 }
  0x35   :  { %v528_v37 = vadd.f32 %v1372_v44, %v526_v51  ;;  %v693_v59 = vadd.f32 %v692_v55, %v691_v30  ;;  %v1530_v36 = vsel %vm475_vm1, %v658_v42, 0.0  ;;  %v1533_v27 = vsel %vm475_vm1, %v659_v46, 0.0  ;;  %v1830_v51 = vld [vmem:[#allocation4_spill] sm:$0xff] }
  0x36   :  { %v1536_v28 = vsel %vm475_vm1, %v660_v47, 0.0  ;;  %v1539_v29 = vsel %vm475_vm1, %v661_v6, 0.0  ;;  %v1542_v33 = vsel %vm475_vm1, %v662_v48, 0.0  ;;  %v1546_v40 = vsel %vm475_vm1, %v663_v0, 0.0 }
  0x37   :  { %v530_v44 = vadd.f32 %v1376_v4, %v528_v37  ;;  %v695_v43 = vadd.f32 %v694_v56, %v693_v59  ;;  %v1549_v42 = vsel %vm475_vm1, %v664_v53, 0.0  ;;  %v1552_v46 = vsel %vm475_vm1, %v665_v54, 0.0  ;;  %v1566_v4 = vld [vmem:[%s1740_s0 + $0xf8] sm:$0xff]  ;;  %v1831_v59 = vld [vmem:[#allocation45_spill] sm:$0xff] }
  0x38   :  { %v1555_v47 = vsel %vm475_vm1, %v666_v3, 0.0  ;;  %v1558_v6 = vsel %vm475_vm1, %v667_v60, 0.0  ;;  %v1561_v48 = vsel %vm475_vm1, %v668_v16, 0.0  ;;  %v1570_v54 = vsel %vm475_vm1, %v669_v62, 0.0  ;;  %v1828_v56 = vld [vmem:[#allocation43_spill] sm:$0xff] }
  0x39   :  { %v532_v0 = vadd.f32 %v1380_v45, %v530_v44  ;;  %v697_v53 = vadd.f32 %v696_v61, %v695_v43  ;;  %v1573_v3 = vsel %vm475_vm1, %v670_v7, 0.0  ;;  %v1576_v60 = vsel %vm475_vm1, %v671_v5, 0.0  ;;  %v1590_v45 = vld [vmem:[%s1740_s0 + $0x100] sm:$0xff]  ;;  %v1832_v43 = vld [vmem:[#allocation5_spill] sm:$0xff] }
  0x3a   :  { %v1579_v16 = vsel %vm475_vm1, %v672_v34, 0.0  ;;  %v1582_v22 = vsel %vm475_vm1, %v673_v2, 0.0  ;;  %v1585_v23 = vsel %vm475_vm1, %v674_v52, 0.0  ;;  %v1594_v5 = vsel %vm475_vm1, %v675_v41, 0.0  ;;  %v1827_v41 = vld [vmem:[#allocation42_spill] sm:$0xff] }
  0x3b   :  { %v534_v62 = vadd.f32 %v1386_v39, %v532_v0  ;;  %v699_v7 = vadd.f32 %v698_v49, %v697_v53  ;;  %v1597_v34 = vsel %vm475_vm1, %v676_v58, 0.0  ;;  %v537_v2 = vsel %vm475_vm1, %v1566_v4, 0.0 }
  0x3c   :  { %v628_v52 = vmul.f32 %v1826_v24, %v1826_v24  ;;  %v702_v15 = vsel %vm475_vm1, %v1410_v14, 0.0  ;;  %v539_v39 = vsel %vm475_vm1, %v1590_v45, 0.0  ;;  %v629_v32 = vmul.f32 %v1827_v41, %v1827_v41  ;;  %v1834_v24 = vld [vmem:[#allocation6_spill] sm:$0xff]  ;;  %v1836_v41 = vld [vmem:[#allocation7_spill] sm:$0xff] }
  0x3d   :  { %v536_v57 = vadd.f32 %v1390_v38, %v534_v62  ;;  %v701_v26 = vadd.f32 %v700_v1, %v699_v7  ;;  %v704_v58 = vsel %vm475_vm1, %v1412_v50, 0.0  ;;  %v630_v61 = vmul.f32 %v1828_v56, %v1828_v56  ;;  %v1829_v38 = vld [vmem:[#allocation44_spill] sm:$0xff]  ;;  %v1833_v62 = vld [vmem:[#allocation46_spill] sm:$0xff] }
  0x3e   :  { %v706_v49 = vsel %vm475_vm1, %v628_v52, 0.0  ;;  %v631_v35 = vmul.f32 %v1829_v38, %v1829_v38  ;;  %v708_v1 = vsel %vm475_vm1, %v629_v32, 0.0  ;;  %v632_v50 = vmul.f32 %v1831_v59, %v1831_v59 }
  0x3f   :  { %v538_v31 = vadd.f32 %v537_v2, %v536_v57  ;;  %v703_v55 = vadd.f32 %v702_v15, %v701_v26  ;;  %v710_v44 = vsel %vm475_vm1, %v630_v61, 0.0  ;;  %v633_v7 = vmul.f32 %v1833_v62, %v1833_v62  ;;  %v1835_v57 = vld [vmem:[#allocation47_spill] sm:$0xff]  ;;  %v1838_v61 = vld [vmem:[#allocation8_spill] sm:$0xff] }
  0x40   :  { %v712_v2 = vsel %vm475_vm1, %v631_v35, 0.0  ;;  %v634_v26 = vmul.f32 %v1835_v57, %v1835_v57 }
  0x41   :  { %v540_v14 = vadd.f32 %v539_v39, %v538_v31  ;;  %v705_v10 = vadd.f32 %v704_v58, %v703_v55  ;;  %v714_v39 = vsel %vm475_vm1, %v632_v50, 0.0  ;;  %v1837_v31 = vld [vmem:[#allocation48_spill] sm:$0xff]  ;;  %v716_v56 = vsel %vm475_vm1, %v633_v7, 0.0 }
  0x42   :  { %v635_v55 = vmul.f32 %v1837_v31, %v1837_v31  ;;  %v718_v35 = vsel %vm475_vm1, %v634_v26, 0.0 }
  0x43   :  { %v542_v30 = vadd.f32 %v1830_v51, %v540_v14  ;;  %v707_v37 = vadd.f32 %v706_v49, %v705_v10  ;;  %v1839_v10 = vld [vmem:[#allocation49_spill] sm:$0xff] }
  0x44   :  { %v636_v38 = vmul.f32 %v1839_v10, %v1839_v10  ;;  %v720_v50 = vsel %vm475_vm1, %v635_v55, 0.0 }
  0x45   :  { %v544_v0 = vadd.f32 %v1832_v43, %v542_v30  ;;  %v709_v53 = vadd.f32 %v708_v1, %v707_v37  ;;  %v1840_v1 = vld [vmem:[#allocation9_spill] sm:$0xff]  ;;  %v1841_v37 = vld [vmem:[#allocation50_spill] sm:$0xff] }
  0x46   :  { %v637_v59 = vmul.f32 %v1841_v37, %v1841_v37  ;;  %v722_v7 = vsel %vm475_vm1, %v636_v38, 0.0 }
  0x47   :  { %v546_v52 = vadd.f32 %v1834_v24, %v544_v0  ;;  %v711_v15 = vadd.f32 %v710_v44, %v709_v53  ;;  %v1842_v44 = vld [vmem:[#allocation10_spill] sm:$0xff]  ;;  %v1843_v53 = vld [vmem:[#allocation51_spill] sm:$0xff] }
  0x48   :  { %v638_v62 = vmul.f32 %v1843_v53, %v1843_v53  ;;  %v724_v26 = vsel %vm475_vm1, %v637_v59, 0.0 }
  0x49   :  { %v548_v32 = vadd.f32 %v1836_v41, %v546_v52  ;;  %v713_v58 = vadd.f32 %v712_v2, %v711_v15  ;;  %v1844_v2 = vld [vmem:[#allocation11_spill] sm:$0xff]  ;;  %v1845_v15 = vld [vmem:[#allocation52_spill] sm:$0xff] }
  0x4a   :  { %v639_v57 = vmul.f32 %v1845_v15, %v1845_v15  ;;  %v726_v55 = vsel %vm475_vm1, %v638_v62, 0.0 }
  0x4b   :  { %v550_v49 = vadd.f32 %v1838_v61, %v548_v32  ;;  %v715_v14 = vadd.f32 %v714_v39, %v713_v58  ;;  %v1846_v39 = vld [vmem:[#allocation12_spill] sm:$0xff]  ;;  %v1847_v58 = vld [vmem:[#allocation53_spill] sm:$0xff] }
  0x4c   :  { %v640_v31 = vmul.f32 %v1847_v58, %v1847_v58  ;;  %v728_v38 = vsel %vm475_vm1, %v639_v57, 0.0  ;;  %v1855_v57 = vld [vmem:[#allocation17_spill] sm:$0xff]  ;;  %v1856_v58 = vld [vmem:[#allocation18_spill] sm:$0xff] }
  0x4d   :  { %v552_v51 = vadd.f32 %v1840_v1, %v550_v49  ;;  %v717_v30 = vadd.f32 %v716_v56, %v715_v14  ;;  %v1848_v56 = vld [vmem:[#allocation13_spill] sm:$0xff]  ;;  %v1849_v14 = vld [vmem:[#allocation54_spill] sm:$0xff] }
  0x4e   :  { %v641_v10 = vmul.f32 %v1849_v14, %v1849_v14  ;;  %v730_v59 = vsel %vm475_vm1, %v640_v31, 0.0 }
  0x4f   :  { %v554_v43 = vadd.f32 %v1842_v44, %v552_v51  ;;  %v719_v0 = vadd.f32 %v718_v35, %v717_v30  ;;  %v1850_v35 = vld [vmem:[#allocation14_spill] sm:$0xff]  ;;  %v1851_v30 = vld [vmem:[#allocation55_spill] sm:$0xff] }
  0x50   :  { %v642_v37 = vmul.f32 %v1851_v30, %v1851_v30  ;;  %v732_v62 = vsel %vm475_vm1, %v641_v10, 0.0  ;;  %v1858_v10 = vld [vmem:[#allocation20_spill] sm:$0xff] }
  0x51   :  { %v556_v24 = vadd.f32 %v1844_v2, %v554_v43  ;;  %v721_v52 = vadd.f32 %v720_v50, %v719_v0  ;;  %v1852_v50 = vld [vmem:[#allocation15_spill] sm:$0xff]  ;;  %v1853_v0 = vld [vmem:[#allocation56_spill] sm:$0xff] }
  0x52   :  { %v643_v53 = vmul.f32 %v1853_v0, %v1853_v0  ;;  %v734_v15 = vsel %vm475_vm1, %v642_v37, 0.0  ;;  %v1860_v37 = vld [vmem:[#allocation22_spill] sm:$0xff]  ;;  %v1862_v0 = vld [vmem:[#allocation24_spill] sm:$0xff] }
  0x53   :  { %v558_v41 = vadd.f32 %v1846_v39, %v556_v24  ;;  %v723_v32 = vadd.f32 %v722_v7, %v721_v52  ;;  %v1854_v7 = vld [vmem:[#allocation16_spill] sm:$0xff]  ;;  %v644_v52 = vmul.f32 %v1566_v4, %v1566_v4 }
  0x55   :  { %v560_v61 = vadd.f32 %v1848_v56, %v558_v41  ;;  %v725_v49 = vadd.f32 %v724_v26, %v723_v32  ;;  %v645_v41 = vmul.f32 %v1590_v45, %v1590_v45  ;;  %v736_v32 = vsel %vm475_vm1, %v643_v53, 0.0 }
  0x56   :  { %v738_v56 = vsel %vm475_vm1, %v644_v52, 0.0  ;;  %v1864_v52 = vld [vmem:[#allocation28_spill] sm:$0xff] }
  0x57   :  { %v562_v1 = vadd.f32 %v1850_v35, %v560_v61  ;;  %v727_v51 = vadd.f32 %v726_v55, %v725_v49  ;;  %v1857_v61 = vld [vmem:[#allocation19_spill] sm:$0xff]  ;;  %v740_v4 = vsel %vm475_vm1, %v645_v41, 0.0  ;;  %v1866_v41 = vld [vmem:[#allocation33_spill] sm:$0xff] }
  0x59   :  { %v564_v44 = vadd.f32 %v1852_v50, %v562_v1  ;;  %v729_v43 = vadd.f32 %v728_v38, %v727_v51  ;;  %v1859_v1 = vld [vmem:[#allocation21_spill] sm:$0xff]  ;;  %v1861_v50 = vld [vmem:[#allocation23_spill] sm:$0xff] }
  0x5b   :  { %v566_v2 = vadd.f32 %v1854_v7, %v564_v44  ;;  %v731_v24 = vadd.f32 %v730_v59, %v729_v43  ;;  %v1863_v7 = vld [vmem:[#allocation27_spill] sm:$0xff] }
  0x5d   :  { %v568_v26 = vadd.f32 %v1855_v57, %v566_v2  ;;  %v733_v39 = vadd.f32 %v732_v62, %v731_v24 }
  0x5f   :  { %v570_v31 = vadd.f32 %v1856_v58, %v568_v26  ;;  %v735_v55 = vadd.f32 %v734_v15, %v733_v39  ;;  %v1865_v26 = vld [vmem:[#allocation29_spill] sm:$0xff]  ;;  %v1867_v58 = vld [vmem:[#allocation34_spill] sm:$0xff] }
  0x61   :  { %v572_v49 = vadd.f32 %v1857_v61, %v570_v31  ;;  %v737_v14 = vadd.f32 %v736_v32, %v735_v55  ;;  %v1868_v55 = vld [vmem:[#allocation35_spill] sm:$0xff]  ;;  %v1869_v61 = vld [vmem:[#allocation37_spill] sm:$0xff] }
  0x63   :  { %v574_v38 = vadd.f32 %v1858_v10, %v572_v49  ;;  %v739_v35 = vadd.f32 %v738_v56, %v737_v14  ;;  %v1870_v14 = vld [vmem:[#allocation38_spill] sm:$0xff]  ;;  %v1871_v10 = vld [vmem:[#allocation39_spill] sm:$0xff] }
  0x65   :  { %v576_v51 = vadd.f32 %v1859_v1, %v574_v38  ;;  %v741_v30 = vadd.f32 %v740_v4, %v739_v35  ;;  %v1872_v35 = vld [vmem:[#allocation40_spill] sm:$0xff] }
  0x67   :  { %v578_v45 = vadd.f32 %v1860_v37, %v576_v51  ;;  %v743_v59 = vadd.f32 %v1492_v63, %v741_v30 }
  0x69   :  { %v580_v44 = vadd.f32 %v1861_v50, %v578_v45  ;;  %v745_v43 = vadd.f32 %v1495_v9, %v743_v59 }
  0x6b   :  { %v582_v53 = vadd.f32 %v1862_v0, %v580_v44  ;;  %v747_v62 = vadd.f32 %v1498_v12, %v745_v43 }
  0x6d   :  { %v584_v2 = vadd.f32 %v1863_v7, %v582_v53  ;;  %v749_v24 = vadd.f32 %v1501_v25, %v747_v62 }
  0x6f   :  { %v586_v15 = vadd.f32 %v1864_v52, %v584_v2  ;;  %v751_v57 = vadd.f32 %v1504_v13, %v749_v24 }
  0x71   :  { %v588_v39 = vadd.f32 %v1865_v26, %v586_v15  ;;  %v753_v63 = vadd.f32 %v1508_v8, %v751_v57 }
  0x73   :  { %v590_v32 = vadd.f32 %v1866_v41, %v588_v39  ;;  %v755_v9 = vadd.f32 %v1511_v11, %v753_v63 }
  0x75   :  { %v592_v31 = vadd.f32 %v1867_v58, %v590_v32  ;;  %v757_v12 = vadd.f32 %v1514_v17, %v755_v9  ;;  %v827_v9 = vld [vmem:[%s1742_s2] sm:$0x1] }
  0x77   :  { %v594_v56 = vadd.f32 %v1868_v55, %v592_v31  ;;  %v759_v25 = vadd.f32 %v1517_v19, %v757_v12 }
  0x79   :  { %v596_v49 = vadd.f32 %v1869_v61, %v594_v56  ;;  %v761_v13 = vadd.f32 %v1520_v20, %v759_v25 }
  0x7b   :  { %v598_v4 = vadd.f32 %v1870_v14, %v596_v49  ;;  %v763_v8 = vadd.f32 %v1523_v21, %v761_v13 }
  0x7d   :  { %v600_v38 = vadd.f32 %v1871_v10, %v598_v4  ;;  %v765_v11 = vadd.f32 %v1527_v18, %v763_v8  ;;  %v474_v18 = vld [vmem:[#allocation2] sm:$0x1] }
  0x7f   :  { %v602_v1 = vadd.f32 %v1872_v35, %v600_v38  ;;  %v767_v17 = vadd.f32 %v1530_v36, %v765_v11 }
  0x81   :  { %v603_v51 = vrot.slane %v602_v1, 4  ;;  %v769_v30 = vadd.f32 %v1533_v27, %v767_v17 }
  0x83   :  { %v604_v19 = vadd.f32 %v603_v51, %v602_v1  ;;  %v771_v37 = vadd.f32 %v1536_v28, %v769_v30 }
  0x85   :  { %v605_v45 = vrot.slane %v604_v19, 2  ;;  %v773_v20 = vadd.f32 %v1539_v29, %v771_v37 }
  0x87   :  { %v606_v59 = vadd.f32 %v605_v45, %v604_v19  ;;  %v775_v21 = vadd.f32 %v1542_v33, %v773_v20 }
  0x89   :  { %v607_v50 = vrot.slane %v606_v59, 1  ;;  %v777_v44 = vadd.f32 %v1546_v40, %v775_v21 }
  0x8b   :  { %v608_v43 = vadd.f32 %v607_v50, %v606_v59  ;;  %v779_v0 = vadd.f32 %v1549_v42, %v777_v44 }
  0x8d   :  { %v609_v36 = vadd.f32 %v608_v43, %v474_v18  ;;  %v781_v53 = vadd.f32 %v1552_v46, %v779_v0 }
  0x8f   :  { %611 = vst.msk [vmem:[#allocation2] sm:$0x1] %vm20_vm0, %v609_v36  ;;  %v783_v27 = vadd.f32 %v1555_v47, %v781_v53 }
  0x91   :  { %v785_v28 = vadd.f32 %v1558_v6, %v783_v27 }
  0x93   :  { %v787_v29 = vadd.f32 %v1561_v48, %v785_v28 }
  0x95   :  { %v789_v33 = vadd.f32 %v1570_v54, %v787_v29  ;;  %v612_v54 = vld [vmem:[#allocation3] sm:$0x1] }
  0x96   :  { %v815_v26 = vld [vmem:[#allocation2] sm:$0x1] }
  0x97   :  { %v791_v62 = vadd.f32 %v1573_v3, %v789_v33 }
  0x99   :  { %v793_v40 = vadd.f32 %v1576_v60, %v791_v62  ;;  %v816_v60 = vmul.f32 0.001953125, %v815_v26 }
  0x9b   :  { %v795_v7 = vadd.f32 %v1579_v16, %v793_v40  ;;  %v819_v16 = vmul.f32 %v816_v60, %v816_v60 }
  0x9d   :  { %v797_v42 = vadd.f32 %v1582_v22, %v795_v7 }
  0x9f   :  { %v799_v46 = vadd.f32 %v1585_v23, %v797_v42 }
  0xa1   :  { %v801_v2 = vadd.f32 %v1594_v5, %v799_v46 }
  0xa3   :  { %v803_v47 = vadd.f32 %v1597_v34, %v801_v2  ;;  %v822_v34 = vld [vmem:[%s1741_s1] sm:$0x1] }
  0xa5   :  { %v804_v24 = vrot.slane %v803_v47, 4 }
  0xa7   :  { %v805_v6 = vadd.f32 %v804_v24, %v803_v47 }
  0xa9   :  { %v806_v52 = vrot.slane %v805_v6, 2 }
  0xab   :  { %v807_v48 = vadd.f32 %v806_v52, %v805_v6 }
  0xad   :  { %v808_v15 = vrot.slane %v807_v48, 1 }
  0xaf   :  { %v809_v57 = vadd.f32 %v808_v15, %v807_v48 }
  0xb1   :  { %v810_v3 = vadd.f32 %v809_v57, %v612_v54 }
  0xb3   :  { %811 = vst.msk [vmem:[#allocation3] sm:$0x1] %vm20_vm0, %v810_v3 }
  0xba   :  { %v817_v22 = vld [vmem:[#allocation3] sm:$0x1] }
  0xbb   :  { %v818_v39 = vmul.f32 0.001953125, %v817_v22 }
  0xbd   :  { %v820_v23 = vsub.f32 %v818_v39, %v819_v16 }
  0xbf   :  { %v821_v63 = vmax.f32 %v820_v23, 0.0 }
  0xc1   :  { %v823_v5 = vadd.f32 1e-05, %v821_v63 }
  0xc3   :  { %840 = vrsqrt.f32 %v823_v5 }
  0xd0   :  { %v841_v41 = vpop.eup %840 }
  0xd1   :  { %v825_v32 = vmul.f32 %v841_v41, %v822_v34 }
  0xd3   :  { %826 = vst.msk [vmem:[%s1743_s3] sm:$0x1] %vm20_vm0, %v825_v32  ;;  %v828_v58 = vmul.f32 %v825_v32, %v816_v60 }
  0xd5   :  { %v829_v31 = vsub.f32 %v827_v9, %v828_v58 }
  0xd7   :  { %830 = vst.msk [vmem:[%s1744_s4] sm:$0x1] %vm20_vm0, %v829_v31 }

// kernel: res_block_forward.3
= control target key start
LH: loop header
LB: loop body
LE: loop exit
PB: predicated region body
PF: predicated region fallthrough
CT: control target
= control target key end

     0   :  { %s1803_s15 = smov 0   ;;  %s2715_s0 = inlined_call_operand.vmem [shape: f32[1,16], index: 0, kind: input, shape index: {}]   ;;  %s2716_s1 = inlined_call_operand.vmem [shape: f32[1,16], index: 1, kind: input, shape index: {}]   ;;  %s2717_s2 = inlined_call_operand.vmem [shape: f32[2,16,16,16], index: 2, kind: input, shape index: {}]   ;;  %s2718_s3 = inlined_call_operand.vmem [shape: bf16[144,128], index: 3, kind: input, shape index: {}]   ;;  %s2719_s4 = inlined_call_operand.vmem [shape: f32[2,256,128], index: 4, kind: output, shape index: {}]  }
   0x1 LB: > { %s1677_s16 = sadd.s32 4294967295, %s1768_s15   ;;  %p1681_p0 = scmp.ge.s32.totalorder %s1768_s15, 1  ;;  %s1768_s15 = sphi %s1803_s15, %s14_s15  }
   0x2   : > { %p162_p1 = scmp.lt.s32.totalorder %s1768_s15, 3 }
   0x4   : > { %p163_p2 = pnand %p1681_p0, %p162_p1 }
   0x5   : > { %p188_p3 = scmp.lt.s32.totalorder (!%p163_p2), %s1677_s16, 1  ;;  %s1771_s29 = smov (!%p163_p2), 32  }
   0x6   : > { %166 = sbr.rel (%p163_p2) target bundleno = 566 (0x236), region = 36  ;;  %s1772_s6 = smov (!%p163_p2), 16  }
   0x7   : > { %s1773_s13 = smov (!%p163_p2), 48   ;;  %s1774_s18 = smov (!%p163_p2), 96  }
   0x8   : > { %s1775_s22 = smov (!%p163_p2), 80   ;;  %s1776_s25 = smov (!%p163_p2), 64  }
   0x9   : > { %s1777_s27 = smov (!%p163_p2), 112  }
   0xb   : > { %vm510_vm0 = vcmask 1040384   ;;  %vm511_vm1 = vsmask.f32 256  ;;  %v1770_v0 = vmov 0   ;;  %vm547_vm3 = vsmask.f32 7424 }
   0xc   : > { %v360_v1 = vrot.slane %v1770_v0, 7  ;;  %vm1812_vm2 = vmand %vm510_vm0, %vm511_vm1  ;;  %1429 = vmatprep.subr.bf16.mxu0 %v1770_v0  ;;  %1717 = vmatprep.subr.bf16.mxu1 %v1770_v0  ;;  %vm804_vm4 = vcmask 1046528   ;;  %s2723_s16 = smov (!%p188_p3, %s1677_s16), 1  ;;  %v1751_v9 = vld [vmem:[%s2718_s3 + $0x38] sm:$0xff]   ;;  %v1835_v11 = vld [vmem:[%s2715_s0] ss:$0 sm:$0xff] }
   0xd   : > { %s1715_s21 = sshll.u32 %s2723_s16, 8  ;;  %1430 = vmatpush1.bf16.msra.mxu0 %v1751_v9  ;;  %1726 = vmatpush1.bf16.msra.mxu1 %v1751_v9  ;;  %v1752_v14 = vld [vmem:[%s2718_s3 + $0x30] sm:$0xff]   ;;  %v1854_v16 = vld [vmem:[%s2716_s1] ss:$0 sm:$0xff]  ;;  %v1753_v33 = vld [vmem:[%s2718_s3 + $0x28] sm:$0xff]   ;;  %vm1062_vm5 = vcmask 130048  }
   0xe   : > { %v1820_v3 = vsel %vm1812_vm2, 0, %v360_v1  ;;  %v530_v4 = vsel %vm1812_vm2, %v360_v1, 0  ;;  %s1849_s26 = scalar_lea.vmem %s2717_s2, %s1715_s21  ;;  %1431 = vmatprep.subr.bf16.mxu0 %v1770_v0  ;;  %1718 = vmatprep.subr.bf16.mxu1 %v1770_v0  ;;  %v1754_v60 = vld [vmem:[%s2718_s3 + $0x20] sm:$0xff]   ;;  %vm1095_vm6 = vcmask 261120   ;;  %vm1128_vm7 = vcmask 392192   ;;  %s2667_s7 = scalar_lea.vmem %s2719_s4, %s1715_s21 }
   0xf   : > { %v549_v5 = vshrl.u32 %v1820_v3, 16  ;;  %v551_v6 = vshll.u32 %v1820_v3, 16  ;;  %v556_v7 = vshll.u32 %v530_v4, 16  ;;  %v805_v8 = vrot.slane %v1820_v3, 1  ;;  %v215_v18 = vld [vmem:[%s1849_s26 + $0x80] sm:$0xff]  ;;  %v216_v19 = vld [vmem:[%s1849_s26 + $0x88] sm:$0xff] }
  0x10   : > { %v806_v10 = vrot.slane %v530_v4, 1  ;;  %v199_v20 = vld [vmem:[%s1849_s26] sm:$0xff]  ;;  %v254_v21 = vmul.f32 %v1835_v11, %v215_v18  ;;  %v255_v22 = vmul.f32 %v1835_v11, %v216_v19  ;;  %v200_v23 = vld [vmem:[%s1849_s26 + $0x8] sm:$0xff]  ;;  %v217_v25 = vld [vmem:[%s1849_s26 + $0x90] sm:$0xff]  ;;  %vm1161_vm8 = vcmask 523264  }
  0x11   : > { %v553_v12 = vrot.slane %v551_v6, 1  ;;  %v558_v13 = vrot.slane %v556_v7, 1  ;;  %v238_v24 = vmul.f32 %v1835_v11, %v199_v20  ;;  %v218_v26 = vld [vmem:[%s1849_s26 + $0x98] sm:$0xff]  ;;  %v239_v28 = vmul.f32 %v1835_v11, %v200_v23  ;;  %v201_v31 = vld [vmem:[%s1849_s26 + $0x10] sm:$0xff]  ;;  %1432 = vmatpush1.bf16.msra.mxu0 %v1752_v14  ;;  %1727 = vmatpush1.bf16.msra.mxu1 %v1752_v14  ;;  %v219_v56 = vld [vmem:[%s1849_s26 + $0xa0] sm:$0xff] }
  0x12   : > { %v1842_v15 = vsel %vm804_vm4, %v805_v8, %v806_v10  ;;  %v256_v29 = vmul.f32 %v1835_v11, %v217_v25  ;;  %v257_v30 = vmul.f32 %v1835_v11, %v218_v26  ;;  %v202_v32 = vld [vmem:[%s1849_s26 + $0x18] sm:$0xff]  ;;  %v293_v34 = vadd.f32 %v1854_v16, %v254_v21  ;;  %v213_v42 = vld [vmem:[%s1849_s26 + $0x70] sm:$0xff]  ;;  %1433 = vmatprep.subr.bf16.mxu0 %v1770_v0  ;;  %v220_v4 = vld [vmem:[%s1849_s26 + $0xa8] sm:$0xff] }
  0x13   : > { %v554_v17 = vor.u32 %v553_v12, %v549_v5  ;;  %853 = vrot.lane.b32.xlu1 %v1842_v15, %s1771_s29  ;;  %v294_v35 = vadd.f32 %v1854_v16, %v255_v22  ;;  %v277_v36 = vadd.f32 %v1854_v16, %v238_v24  ;;  %v240_v37 = vmul.f32 %v1835_v11, %v201_v31  ;;  %v214_v43 = vld [vmem:[%s1849_s26 + $0x78] sm:$0xff]  ;;  %v1756_v25 = vld [vmem:[%s2718_s3 + $0x10] sm:$0xff]  }
  0x14   : > { %v278_v38 = vadd.f32 %v1854_v16, %v239_v28  ;;  %v295_v39 = vadd.f32 %v1854_v16, %v256_v29  ;;  %v296_v40 = vadd.f32 %v1854_v16, %v257_v30  ;;  %v241_v41 = vmul.f32 %v1835_v11, %v202_v32  ;;  %1719 = vmatprep.subr.bf16.mxu1 %v1770_v0  ;;  %v1755_v5 = vld [vmem:[%s2718_s3 + $0x18] sm:$0xff]  }
  0x15   : > { %v1870_v27 = vsel %vm547_vm3, %v554_v17, %v558_v13  ;;  %v325_v44 = vmax.f32 %v293_v34, 0.0  ;;  %v326_v45 = vmax.f32 %v294_v35, 0.0  ;;  %v309_v46 = vmax.f32 %v277_v36, 0.0  ;;  %1434 = vmatpush1.bf16.msra.mxu0 %v1753_v33  ;;  %1728 = vmatpush1.bf16.msra.mxu1 %v1753_v33 }
  0x16   : > { %740 = vrot.lane.b32.xlu0 %v1870_v27, %s1772_s6  ;;  %v279_v47 = vadd.f32 %v1854_v16, %v240_v37  ;;  %v310_v48 = vmax.f32 %v278_v38, 0.0  ;;  %v327_v49 = vmax.f32 %v295_v39, 0.0  ;;  %v328_v50 = vmax.f32 %v296_v40, 0.0  ;;  %1435 = vmatprep.subr.bf16.mxu0 %v1770_v0 }
  0x17   : > { %v280_v51 = vadd.f32 %v1854_v16, %v241_v41  ;;  %v349_v52 = vpack.c.bf16 %v326_v45, %v325_v44  ;;  %v252_v54 = vmul.f32 %v1835_v11, %v213_v42  ;;  %v253_v55 = vmul.f32 %v1835_v11, %v214_v43  ;;  %1720 = vmatprep.subr.bf16.mxu1 %v1770_v0 }
  0x18   : > { %v311_v53 = vmax.f32 %v279_v47, 0.0  ;;  %v341_v57 = vpack.c.bf16 %v310_v48, %v309_v46  ;;  %v350_v58 = vpack.c.bf16 %v328_v50, %v327_v49  ;;  %v258_v19 = vmul.f32 %v1835_v11, %v219_v56  ;;  %v1757_v47 = vld [vmem:[%s2718_s3 + $0x8] sm:$0xff]  }
  0x19   : > { %v312_v59 = vmax.f32 %v280_v51, 0.0  ;;  %v421_v61 = vshrl.u32 %v349_v52, 16  ;;  %v424_v62 = vshll.u32 %v349_v52, 16  ;;  %v291_v63 = vadd.f32 %v1854_v16, %v252_v54  ;;  %1436 = vmatpush1.bf16.msra.mxu0 %v1754_v60  ;;  %1729 = vmatpush1.bf16.msra.mxu1 %v1754_v60 }
  0x1a   : > { %v292_v1 = vadd.f32 %v1854_v16, %v253_v55  ;;  %v365_v6 = vshrl.u32 %v341_v57, 16  ;;  %v368_v7 = vshll.u32 %v341_v57, 16  ;;  %v428_v8 = vshrl.u32 %v350_v58, 16  ;;  %1437 = vmatprep.subr.bf16.mxu0 %v1770_v0  ;;  %1721 = vmatprep.subr.bf16.mxu1 %v1770_v0 }
  0x1b   : > { %v431_v9 = vshll.u32 %v350_v58, 16  ;;  %v423_v10 = vrot.slane %v421_v61, 7  ;;  %v342_v12 = vpack.c.bf16 %v312_v59, %v311_v53  ;;  %v323_v13 = vmax.f32 %v291_v63, 0.0 }
  0x1c   : > { %v324_v14 = vmax.f32 %v292_v1, 0.0  ;;  %v367_v17 = vrot.slane %v365_v6, 7  ;;  %v1911_v18 = vrot.slane %v428_v8, 7  ;;  %v1915_v20 = vmul.f32 %v1835_v11, %v220_v4  ;;  %v1758_v1 = vld [vmem:[%s2718_s3] sm:$0xff]  }
  0x1d   : > { %v426_v21 = vor.u32 %v424_v62, %v423_v10  ;;  %v372_v22 = vshrl.u32 %v342_v12, 16  ;;  %v375_v23 = vshll.u32 %v342_v12, 16  ;;  %v539_v30 = vsel %vm1812_vm2, %v423_v10, 0  ;;  %1438 = vmatpush1.bf16.msra.mxu0 %v1755_v5  ;;  %1730 = vmatpush1.bf16.msra.mxu1 %v1755_v5 }
  0x1e   : > { %v348_v24 = vpack.c.bf16 %v324_v14, %v323_v13  ;;  %v370_v26 = vor.u32 %v368_v7, %v367_v17  ;;  %v433_v28 = vor.u32 %v431_v9, %v1911_v18  ;;  %v531_v29 = vsel %vm1812_vm2, %v367_v17, 0  ;;  %1439 = vmatprep.subr.bf16.mxu0 %v1770_v0  ;;  %1722 = vmatprep.subr.bf16.mxu1 %v1770_v0 }
  0x1f   : > { %v1928_v31 = vsel %vm1812_vm2, 0, %v426_v21  ;;  %v1930_v32 = vrot.slane %v372_v22, 7  ;;  %v809_v37 = vrot.slane %v531_v29, 1  ;;  %v833_v42 = vrot.slane %v539_v30, 1 }
  0x20   : > { %v414_v33 = vshrl.u32 %v348_v24, 16  ;;  %v417_v34 = vshll.u32 %v348_v24, 16  ;;  %902 = vrot.lane.b32.xlu1 %v1928_v31, %s1773_s13  ;;  %v1937_v35 = vsel %vm1812_vm2, 0, %v370_v26  ;;  %v1941_v36 = vsel %vm1812_vm2, 0, %v433_v28  ;;  %v1759_v24 = vld [vmem:[%s2718_s3 + $0x40] sm:$0xff]  }
  0x21   : > { %v832_v38 = vrot.slane %v1928_v31, 1  ;;  %886 = vrot.lane.b32.xlu0 %v1937_v35, %s1773_s13  ;;  %v377_v39 = vor.u32 %v375_v23, %v1930_v32  ;;  %v808_v41 = vrot.slane %v1937_v35, 1  ;;  %v657_v43 = vshrl.u32 %v1928_v31, 16  ;;  %1440 = vmatpush1.bf16.msra.mxu0 %v1756_v25 }
  0x22   : > { %v416_v40 = vrot.slane %v414_v33, 7  ;;  %v659_v44 = vshll.u32 %v1928_v31, 16  ;;  %v664_v45 = vshll.u32 %v539_v30, 16  ;;  %v1952_v46 = vadd.f32 %v1854_v16, %v258_v19  ;;  %1441 = vmatprep.subr.bf16.mxu0 %v1770_v0  ;;  %1731 = vmatpush1.bf16.msra.mxu1 %v1756_v25 }
  0x23   : > { %v1959_v48 = vsel %vm1812_vm2, 0, %v377_v39  ;;  %v561_v51 = vshrl.u32 %v1937_v35, 16  ;;  %v1968_v53 = vsel %vm804_vm4, %v808_v41, %v809_v37  ;;  %v1977_v57 = vsel %vm804_vm4, %v832_v38, %v833_v42  ;;  %1723 = vmatprep.subr.bf16.mxu1 %v1770_v0  ;;  %v203_v37 = vld [vmem:[%s1849_s26 + $0x20] sm:$0xff]  ;;  %v204_v38 = vld [vmem:[%s1849_s26 + $0x28] sm:$0xff] }
  0x24   : > { %v419_v49 = vor.u32 %v417_v34, %v416_v40  ;;  %v538_v50 = vsel %vm1812_vm2, %v416_v40, 0  ;;  %1014 = vrot.lane.b32.xlu1 %v1941_v36, %s1774_s18  ;;  %v661_v55 = vrot.slane %v659_v44, 1  ;;  %v563_v58 = vshll.u32 %v1937_v35, 16 }
  0x25   : > { %v830_v52 = vrot.slane %v538_v50, 1  ;;  %v652_v54 = vshll.u32 %v538_v50, 16  ;;  %998 = vrot.lane.b32.xlu0 %v1959_v48, %s1774_s18  ;;  %v568_v59 = vshll.u32 %v531_v29, 16  ;;  %v666_v63 = vrot.slane %v664_v45, 1  ;;  %1442 = vmatpush1.bf16.msra.mxu0 %v1757_v47 }
  0x26   : > { %v1974_v56 = vsel %vm1812_vm2, 0, %v419_v49  ;;  %v662_v4 = vor.u32 %v661_v55, %v657_v43  ;;  %v565_v5 = vrot.slane %v563_v58, 1  ;;  %v540_v7 = vsel %vm1812_vm2, %v1911_v18, 0  ;;  %1443 = vmatprep.subr.bf16.mxu0 %v1770_v0  ;;  %1732 = vmatpush1.bf16.msra.mxu1 %v1757_v47 }
  0x27   : > { %v829_v60 = vrot.slane %v1974_v56, 1  ;;  %v645_v61 = vshrl.u32 %v1974_v56, 16  ;;  %v647_v62 = vshll.u32 %v1974_v56, 16  ;;  %v570_v6 = vrot.slane %v568_v59, 1  ;;  %1724 = vmatprep.subr.bf16.mxu1 %v1770_v0 }
  0x28   : > { %v654_v10 = vrot.slane %v652_v54, 1  ;;  %v671_v12 = vshll.u32 %v1941_v36, 16  ;;  %v566_v13 = vor.u32 %v565_v5, %v561_v51  ;;  %v669_v14 = vshrl.u32 %v1941_v36, 16 }
  0x29   : > { %v1992_v8 = vsel %vm804_vm4, %v829_v60, %v830_v52  ;;  %v649_v9 = vrot.slane %v647_v62, 1  ;;  %966 = vrot.lane.b32.xlu0 %v1968_v53, %s1775_s22  ;;  %v676_v17 = vshll.u32 %v540_v7, 16  ;;  %v532_v18 = vsel %vm1812_vm2, %v1930_v32, 0  ;;  %1444 = vmatpush1.bf16.msra.mxu0 %v1758_v1 }
  0x2a   : > { %869 = vrot.lane.b32.xlu1 %v1992_v8, %s1771_s29  ;;  %v673_v21 = vrot.slane %v671_v12, 1  ;;  %v573_v22 = vshrl.u32 %v1959_v48, 16  ;;  %v575_v23 = vshll.u32 %v1959_v48, 16  ;;  %v2010_v25 = vsel %vm547_vm3, %v662_v4, %v666_v63  ;;  %1459 = vmatprep.subr.bf16.mxu0 %v1770_v0  ;;  %v205_v12 = vld [vmem:[%s1849_s26 + $0x30] sm:$0xff] }
  0x2b   : > { %v650_v19 = vor.u32 %v649_v9, %v645_v61  ;;  %v571_v26 = vsel %vm547_vm3, %v566_v13, %v570_v6  ;;  %v580_v28 = vshll.u32 %v532_v18, 16  ;;  %v835_v29 = vrot.slane %v1941_v36, 1  ;;  %1733 = vmatpush1.bf16.msra.mxu1 %v1758_v1  ;;  %v221_v9 = vld [vmem:[%s1849_s26 + $0xb0] sm:$0xff]  ;;  %v206_v13 = vld [vmem:[%s1849_s26 + $0x38] sm:$0xff] }
  0x2c   : > { %v678_v32 = vrot.slane %v676_v17, 1  ;;  %v577_v33 = vrot.slane %v575_v23, 1  ;;  %v836_v34 = vrot.slane %v540_v7, 1  ;;  %v674_v39 = vor.u32 %v673_v21, %v669_v14  ;;  %1725 = vmatprep.subr.bf16.mxu1 %v1770_v0 }
  0x2d   : > { %v2016_v30 = vsel %vm547_vm3, %v650_v19, %v654_v10  ;;  %v811_v40 = vrot.slane %v1959_v48, 1  ;;  %v812_v41 = vrot.slane %v532_v18, 1  ;;  %v298_v42 = vadd.f32 %v1854_v16, %v1915_v20  ;;  %1460 = vmatpush2.bf16.msra.mxu0 %v1759_v24  ;;  %v222_v10 = vld [vmem:[%s1849_s26 + $0xb8] sm:$0xff] }
  0x2e   : > { %982 = vrot.lane.b32.xlu1 %v1977_v57, %s1775_s22  ;;  %756 = vrot.lane.b32.xlu0 %v2016_v30, %s1772_s6  ;;  %v578_v43 = vor.u32 %v577_v33, %v573_v22  ;;  %v582_v44 = vrot.slane %v580_v28, 1  ;;  %v2028_v45 = vsel %vm804_vm4, %v835_v29, %v836_v34  ;;  %v329_v47 = vmax.f32 %v1952_v46, 0.0 }
  0x2f   : > { %v330_v49 = vmax.f32 %v298_v42, 0.0  ;;  %v242_v50 = vmul.f32 %v1835_v11, %v203_v37  ;;  %v243_v51 = vmul.f32 %v1835_v11, %v204_v38  ;;  %1705 = vmatprep.mubr.msk.bf16.mxu1 %vm1062_vm5, %v2028_v45  ;;  %v2037_v20 = vsel %vm804_vm4, %v811_v40, %v812_v41  ;;  %1734 = vmatpush2.bf16.msra.mxu1 %v1759_v24 }
  0x30   : > { %v2045_v54 = vsel %vm547_vm3, %v674_v39, %v678_v32  ;;  %v2048_v55 = vsel %vm547_vm3, %v578_v43, %v582_v44  ;;  %1697 = vmatprep.mubr.msk.bf16.mxu0 %vm1062_vm5, %v2037_v20  ;;  %v260_v14 = vmul.f32 %v1835_v11, %v221_v9  ;;  %v261_v17 = vmul.f32 %v1835_v11, %v222_v10  ;;  %v224_v9 = vld [vmem:[%s1849_s26 + $0xc8] sm:$0xff]  ;;  %v207_v10 = vld [vmem:[%s1849_s26 + $0x40] sm:$0xff] }
  0x31   : > { %v351_v0 = vpack.c.bf16 %v330_v49, %v329_v47  ;;  %v281_v46 = vadd.f32 %v1854_v16, %v242_v50  ;;  %v282_v52 = vadd.f32 %v1854_v16, %v243_v51  ;;  %v244_v21 = vmul.f32 %v1835_v11, %v205_v12  ;;  %v208_v12 = vld [vmem:[%s1849_s26 + $0x48] sm:$0xff] }
  0x32   : > { %946 = vrot.lane.b32.xlu1 %v2010_v25, %s1776_s25  ;;  %930 = vrot.lane.b32.xlu0 %v571_v26, %s1776_s25  ;;  %v245_v22 = vmul.f32 %v1835_v11, %v206_v13  ;;  %v300_v29 = vadd.f32 %v1854_v16, %v261_v17  ;;  %v246_v17 = vmul.f32 %v1835_v11, %v207_v10  ;;  %vm1194_vm9 = vcmask 654336  }
  0x33   : > { %v435_v58 = vshrl.u32 %v351_v0, 16  ;;  %v313_v59 = vmax.f32 %v281_v46, 0.0  ;;  %v314_v60 = vmax.f32 %v282_v52, 0.0  ;;  %v438_v63 = vshll.u32 %v351_v0, 16 }
  0x34   : > { %v283_v32 = vadd.f32 %v1854_v16, %v244_v21  ;;  %v284_v33 = vadd.f32 %v1854_v16, %v245_v22  ;;  %v332_v43 = vmax.f32 %v300_v29, 0.0  ;;  %v247_v21 = vmul.f32 %v1835_v11, %v208_v12 }
  0x35   : > { %v343_v61 = vpack.c.bf16 %v314_v60, %v313_v59  ;;  %v437_v62 = vrot.slane %v435_v58, 7  ;;  %vm1227_vm10 = vcmask 785408   ;;  %vm1260_vm11 = vcmask 916480  }
  0x36   : > { %1046 = vrot.lane.b32.xlu1 %v2045_v54, %s1777_s27  ;;  %1030 = vrot.lane.b32.xlu0 %v2048_v55, %s1777_s27  ;;  %v315_v44 = vmax.f32 %v283_v32, 0.0  ;;  %v316_v47 = vmax.f32 %v284_v33, 0.0 }
  0x37   : > { %v379_v1 = vshrl.u32 %v343_v61, 16  ;;  %v382_v4 = vshll.u32 %v343_v61, 16  ;;  %v440_v6 = vor.u32 %v438_v63, %v437_v62 }
  0x38   : > { %v344_v52 = vpack.c.bf16 %v316_v47, %v315_v44 }
  0x39   : > { %v381_v5 = vrot.slane %v379_v1, 7  ;;  %v2071_v18 = vsel %vm1812_vm2, 0, %v440_v6 }
  0x3a   : > { %758 = vrot.lane.b32.xlu1 %v2010_v25, %s1772_s6  ;;  %742 = vrot.lane.b32.xlu0 %v571_v26, %s1772_s6  ;;  %v683_v23 = vshll.u32 %v2071_v18, 16  ;;  %v299_v26 = vadd.f32 %v1854_v16, %v260_v14  ;;  %v681_v34 = vshrl.u32 %v2071_v18, 16  ;;  %v386_v61 = vshrl.u32 %v344_v52, 16 }
  0x3b   : > { %v384_v7 = vor.u32 %v382_v4, %v381_v5  ;;  %v2092_v28 = vsel %vm1812_vm2, %v381_v5, 0  ;;  %v389_v4 = vshll.u32 %v344_v52, 16  ;;  %v263_v14 = vmul.f32 %v1835_v11, %v224_v9 }
  0x3c   : > { %v685_v38 = vrot.slane %v683_v23, 1  ;;  %v592_v41 = vshll.u32 %v2092_v28, 16  ;;  %v331_v42 = vmax.f32 %v299_v26, 0.0  ;;  %v388_v1 = vrot.slane %v386_v61, 7 }
  0x3d   : > { %v2075_v19 = vsel %vm1812_vm2, 0, %v384_v7  ;;  %v223_v7 = vld [vmem:[%s1849_s26 + $0xc0] sm:$0xff]  ;;  %v815_v23 = vrot.slane %v2092_v28, 1  ;;  %v286_v28 = vadd.f32 %v1854_v16, %v247_v21  ;;  %v209_v21 = vld [vmem:[%s1849_s26 + $0x50] sm:$0xff] }
  0x3e   : > { %871 = vrot.lane.b32.xlu1 %v1977_v57, %s1771_s29  ;;  %855 = vrot.lane.b32.xlu0 %v1968_v53, %s1771_s29  ;;  %v2085_v53 = vsel %vm1812_vm2, %v437_v62, 0  ;;  %v587_v24 = vshll.u32 %v2075_v19, 16  ;;  %v585_v39 = vshrl.u32 %v2075_v19, 16  ;;  %v686_v49 = vor.u32 %v685_v38, %v681_v34 }
  0x3f   : > { %v688_v37 = vshll.u32 %v2085_v53, 16  ;;  %v594_v0 = vrot.slane %v592_v41, 1  ;;  %v352_v46 = vpack.c.bf16 %v332_v43, %v331_v42  ;;  %v391_v6 = vor.u32 %v389_v4, %v388_v1 }
  0x40   : > { %v589_v40 = vrot.slane %v587_v24, 1  ;;  %v262_v13 = vmul.f32 %v1835_v11, %v223_v7  ;;  %v814_v22 = vrot.slane %v2075_v19, 1  ;;  %v2164_v33 = vsel %vm1812_vm2, %v388_v1, 0 }
  0x41   : > { %v690_v50 = vrot.slane %v688_v37, 1  ;;  %v442_v60 = vshrl.u32 %v352_v46, 16  ;;  %v445_v63 = vshll.u32 %v352_v46, 16  ;;  %v285_v34 = vadd.f32 %v1854_v16, %v246_v17  ;;  %v226_v17 = vld [vmem:[%s1849_s26 + $0xd8] sm:$0xff] }
  0x42   : > { %904 = vrot.lane.b32.xlu1 %v1941_v36, %s1773_s13  ;;  %888 = vrot.lane.b32.xlu0 %v1959_v48, %s1773_s13  ;;  %v590_v51 = vor.u32 %v589_v40, %v585_v39  ;;  %v301_v32 = vadd.f32 %v1854_v16, %v262_v13  ;;  %v2177_v38 = vsel %vm804_vm4, %v814_v22, %v815_v23  ;;  %v604_v44 = vshll.u32 %v2164_v33, 16 }
  0x43   : > { %v2114_v58 = vsel %vm547_vm3, %v686_v49, %v690_v50  ;;  %v444_v62 = vrot.slane %v442_v60, 7  ;;  %v317_v50 = vmax.f32 %v285_v34, 0.0  ;;  %v265_v22 = vmul.f32 %v1835_v11, %v226_v17 }
  0x44   : > { %v2117_v59 = vsel %vm547_vm3, %v590_v51, %v594_v0  ;;  %v333_v47 = vmax.f32 %v301_v32, 0.0  ;;  %v318_v51 = vmax.f32 %v286_v28, 0.0  ;;  %v606_v60 = vrot.slane %v604_v44, 1 }
  0x45   : > { %v447_v5 = vor.u32 %v445_v63, %v444_v62  ;;  %v2157_v24 = vsel %vm1812_vm2, %v444_v62, 0  ;;  %v248_v23 = vmul.f32 %v1835_v11, %v209_v21  ;;  %v818_v34 = vrot.slane %v2164_v33, 1 }
  0x46   : > { %948 = vrot.lane.b32.xlu1 %v2045_v54, %s1776_s25  ;;  %932 = vrot.lane.b32.xlu0 %v2048_v55, %s1776_s25  ;;  %v700_v40 = vshll.u32 %v2157_v24, 16  ;;  %v345_v62 = vpack.c.bf16 %v318_v51, %v317_v50  ;;  %v842_v32 = vrot.slane %v2157_v24, 1  ;;  %v304_v24 = vadd.f32 %v1854_v16, %v265_v22 }
  0x48   : > { %v702_v46 = vrot.slane %v700_v40, 1  ;;  %v396_v10 = vshll.u32 %v345_v62, 16 }
  0x4a   : > { %984 = vrot.lane.b32.xlu1 %v2028_v45, %s1775_s22  ;;  %968 = vrot.lane.b32.xlu0 %v2037_v20, %s1775_s22 }
  0x4e   : > { %1016 = vrot.lane.b32.xlu1 %v2071_v18, %s1774_s18  ;;  %1000 = vrot.lane.b32.xlu0 %v2075_v19, %s1774_s18 }
  0x52   : > { %1048 = vrot.lane.b32.xlu1 %v2114_v58, %s1777_s27  ;;  %1032 = vrot.lane.b32.xlu0 %v2117_v59, %s1777_s27 }
  0x56   : > { %760 = vrot.lane.b32.xlu1 %v2045_v54, %s1772_s6  ;;  %744 = vrot.lane.b32.xlu0 %v2048_v55, %s1772_s6  ;;  %v2139_v54 = vsel %vm1812_vm2, 0, %v447_v5  ;;  %v2143_v55 = vsel %vm1812_vm2, 0, %v391_v6  ;;  %v393_v5 = vshrl.u32 %v345_v62, 16 }
  0x57   : > { %v695_v26 = vshll.u32 %v2139_v54, 16  ;;  %v599_v29 = vshll.u32 %v2143_v55, 16  ;;  %v693_v39 = vshrl.u32 %v2139_v54, 16  ;;  %v597_v42 = vshrl.u32 %v2143_v55, 16 }
  0x58   : > { %v395_v9 = vrot.slane %v393_v5, 7 }
  0x59   : > { %v697_v41 = vrot.slane %v695_v26, 1  ;;  %v601_v43 = vrot.slane %v599_v29, 1  ;;  %v841_v29 = vrot.slane %v2139_v54, 1 }
  0x5a   : > { %873 = vrot.lane.b32.xlu1 %v2028_v45, %s1771_s29  ;;  %857 = vrot.lane.b32.xlu0 %v2037_v20, %s1771_s29  ;;  %v838_v45 = vrot.slane %v2071_v18, 1  ;;  %v839_v20 = vrot.slane %v2085_v53, 1  ;;  %v302_v53 = vadd.f32 %v1854_v16, %v263_v14  ;;  %v398_v13 = vor.u32 %v396_v10, %v395_v9  ;;  %v225_v14 = vld [vmem:[%s1849_s26 + $0xd0] sm:$0xff] }
  0x5b   : > { %v698_v0 = vor.u32 %v697_v41, %v693_v39  ;;  %v602_v52 = vor.u32 %v601_v43, %v597_v42  ;;  %v2242_v42 = vsel %vm1812_vm2, %v395_v9, 0  ;;  %v287_v43 = vadd.f32 %v1854_v16, %v248_v23 }
  0x5c   : > { %v2174_v37 = vsel %vm804_vm4, %v838_v45, %v839_v20  ;;  %v334_v49 = vmax.f32 %v302_v53, 0.0  ;;  %v210_v45 = vld [vmem:[%s1849_s26 + $0x58] sm:$0xff]  ;;  %v264_v20 = vmul.f32 %v1835_v11, %v225_v14  ;;  %v817_v53 = vrot.slane %v2143_v55, 1 }
  0x5d   : > { %v2192_v63 = vsel %vm547_vm3, %v698_v0, %v702_v46  ;;  %v2195_v1 = vsel %vm547_vm3, %v602_v52, %v606_v60  ;;  %v249_v26 = vmul.f32 %v1835_v11, %v210_v45  ;;  %v2252_v44 = vsel %vm804_vm4, %v841_v29, %v842_v32 }
  0x5e   : > { %906 = vrot.lane.b32.xlu1 %v2071_v18, %s1773_s13  ;;  %890 = vrot.lane.b32.xlu0 %v2075_v19, %s1773_s13  ;;  %v353_v61 = vpack.c.bf16 %v334_v49, %v333_v47  ;;  %v303_v41 = vadd.f32 %v1854_v16, %v264_v20  ;;  %v2255_v47 = vsel %vm804_vm4, %v817_v53, %v818_v34  ;;  %v616_v52 = vshll.u32 %v2242_v42, 16  ;;  %v227_v34 = vld [vmem:[%s1849_s26 + $0xe0] sm:$0xff] }
  0x5f   : > { %v288_v33 = vadd.f32 %v1854_v16, %v249_v26  ;;  %v319_v62 = vmax.f32 %v287_v43, 0.0 }
  0x60   : > { %v449_v4 = vshrl.u32 %v353_v61, 16  ;;  %v452_v7 = vshll.u32 %v353_v61, 16  ;;  %v335_v60 = vmax.f32 %v303_v41, 0.0  ;;  %v336_v61 = vmax.f32 %v304_v24, 0.0  ;;  %v212_v41 = vld [vmem:[%s1849_s26 + $0x68] sm:$0xff] }
  0x61   : > { %v618_v9 = vrot.slane %v616_v52, 1 }
  0x62   : > { %950 = vrot.lane.b32.xlu1 %v2114_v58, %s1776_s25  ;;  %934 = vrot.lane.b32.xlu0 %v2117_v59, %s1776_s25  ;;  %v451_v6 = vrot.slane %v449_v4, 7  ;;  %v320_v4 = vmax.f32 %v288_v33, 0.0  ;;  %v354_v10 = vpack.c.bf16 %v336_v61, %v335_v60  ;;  %v266_v33 = vmul.f32 %v1835_v11, %v227_v34 }
  0x63   : > { %v821_v60 = vrot.slane %v2242_v42, 1 }
  0x64   : > { %v454_v12 = vor.u32 %v452_v7, %v451_v6  ;;  %v2235_v28 = vsel %vm1812_vm2, %v451_v6, 0  ;;  %v456_v17 = vshrl.u32 %v354_v10, 16  ;;  %v459_v20 = vshll.u32 %v354_v10, 16 }
  0x65   : > { %v712_v50 = vshll.u32 %v2235_v28, 16 }
  0x66   : > { %986 = vrot.lane.b32.xlu1 %v2174_v37, %s1775_s22  ;;  %970 = vrot.lane.b32.xlu0 %v2177_v38, %s1775_s22  ;;  %v458_v45 = vrot.slane %v456_v17, 7 }
  0x67   : > { %v714_v6 = vrot.slane %v712_v50, 1 }
  0x68   : > { %v461_v32 = vor.u32 %v459_v20, %v458_v45 }
  0x6a   : > { %1018 = vrot.lane.b32.xlu1 %v2139_v54, %s1774_s18  ;;  %1002 = vrot.lane.b32.xlu0 %v2143_v55, %s1774_s18 }
  0x6e   : > { %1050 = vrot.lane.b32.xlu1 %v2192_v63, %s1777_s27  ;;  %1034 = vrot.lane.b32.xlu0 %v2195_v1, %s1777_s27 }
  0x72   : > { %762 = vrot.lane.b32.xlu1 %v2114_v58, %s1772_s6  ;;  %746 = vrot.lane.b32.xlu0 %v2117_v59, %s1772_s6  ;;  %v2217_v58 = vsel %vm1812_vm2, 0, %v454_v12  ;;  %v2221_v59 = vsel %vm1812_vm2, 0, %v398_v13  ;;  %v346_v12 = vpack.c.bf16 %v320_v4, %v319_v62  ;;  %v2319_v62 = vsel %vm1812_vm2, %v458_v45, 0 }
  0x73   : > { %v707_v39 = vshll.u32 %v2217_v58, 16  ;;  %v611_v40 = vshll.u32 %v2221_v59, 16  ;;  %v705_v49 = vshrl.u32 %v2217_v58, 16  ;;  %v609_v0 = vshrl.u32 %v2221_v59, 16 }
  0x74   : > { %v400_v21 = vshrl.u32 %v346_v12, 16  ;;  %v403_v23 = vshll.u32 %v346_v12, 16  ;;  %v820_v52 = vrot.slane %v2221_v59, 1 }
  0x75   : > { %v709_v51 = vrot.slane %v707_v39, 1  ;;  %v613_v46 = vrot.slane %v611_v40, 1  ;;  %v228_v39 = vld [vmem:[%s1849_s26 + $0xe8] sm:$0xff]  ;;  %v211_v40 = vld [vmem:[%s1849_s26 + $0x60] sm:$0xff] }
  0x76   : > { %875 = vrot.lane.b32.xlu1 %v2174_v37, %s1771_s29  ;;  %859 = vrot.lane.b32.xlu0 %v2177_v38, %s1771_s29  ;;  %v402_v22 = vrot.slane %v400_v21, 7  ;;  %v250_v50 = vmul.f32 %v1835_v11, %v211_v40  ;;  %v2339_v12 = vsel %vm804_vm4, %v820_v52, %v821_v60  ;;  %v724_v21 = vshll.u32 %v2319_v62, 16 }
  0x77   : > { %v710_v5 = vor.u32 %v709_v51, %v705_v49  ;;  %v614_v7 = vor.u32 %v613_v46, %v609_v0  ;;  %v267_v49 = vmul.f32 %v1835_v11, %v228_v39  ;;  %v251_v51 = vmul.f32 %v1835_v11, %v212_v41 }
  0x78   : > { %v405_v53 = vor.u32 %v403_v23, %v402_v22  ;;  %v844_v0 = vrot.slane %v2217_v58, 1  ;;  %v845_v46 = vrot.slane %v2235_v28, 1  ;;  %v305_v28 = vadd.f32 %v1854_v16, %v266_v33 }
  0x79   : > { %v2270_v13 = vsel %vm547_vm3, %v710_v5, %v714_v6  ;;  %v2273_v14 = vsel %vm547_vm3, %v614_v7, %v618_v9  ;;  %v2325_v6 = vsel %vm1812_vm2, %v402_v22, 0  ;;  %v306_v7 = vadd.f32 %v1854_v16, %v267_v49 }
  0x7a   : > { %908 = vrot.lane.b32.xlu1 %v2139_v54, %s1773_s13  ;;  %892 = vrot.lane.b32.xlu0 %v2143_v55, %s1773_s13  ;;  %v289_v42 = vadd.f32 %v1854_v16, %v250_v50  ;;  %v290_v9 = vadd.f32 %v1854_v16, %v251_v51  ;;  %v2336_v10 = vsel %vm804_vm4, %v844_v0, %v845_v46  ;;  %v628_v22 = vshll.u32 %v2325_v6, 16 }
  0x7b   : > { %v338_v34 = vmax.f32 %v306_v7, 0.0  ;;  %v726_v33 = vrot.slane %v724_v21, 1 }
  0x7c   : > { %v321_v39 = vmax.f32 %v289_v42, 0.0  ;;  %v322_v40 = vmax.f32 %v290_v9, 0.0  ;;  %v630_v50 = vrot.slane %v628_v22, 1 }
  0x7e   : > { %952 = vrot.lane.b32.xlu1 %v2192_v63, %s1776_s25  ;;  %936 = vrot.lane.b32.xlu0 %v2195_v1, %s1776_s25 }
  0x82   : > { %988 = vrot.lane.b32.xlu1 %v2252_v44, %s1775_s22  ;;  %972 = vrot.lane.b32.xlu0 %v2255_v47, %s1775_s22 }
  0x85   : > { %v2279_v26 = vpop.permute.xlu1 %853 }
  0x86   : > { %1020 = vrot.lane.b32.xlu1 %v2217_v58, %s1774_s18  ;;  %1004 = vrot.lane.b32.xlu0 %v2221_v59, %s1774_s18 }
  0x88   : > { %v741_v29 = vpop.permute.xlu0 %740 }
  0x89   : > { %v1064_v51 = vsel %vm1062_vm5, %v1820_v3, %v741_v29 }
  0x8a   : > { %1052 = vrot.lane.b32.xlu1 %v2270_v13, %s1777_s27  ;;  %1036 = vrot.lane.b32.xlu0 %v2273_v14, %s1777_s27  ;;  %v1097_v29 = vsel %vm1095_vm6, %v1064_v51, %v2279_v26  ;;  %v229_v51 = vld [vmem:[%s1849_s26 + $0xf0] sm:$0xff] }
  0x8e   : > { %764 = vrot.lane.b32.xlu1 %v2192_v63, %s1772_s6  ;;  %748 = vrot.lane.b32.xlu0 %v2195_v1, %s1772_s6  ;;  %v2297_v63 = vsel %vm1812_vm2, 0, %v461_v32  ;;  %v2301_v1 = vsel %vm1812_vm2, 0, %v405_v53  ;;  %v337_v53 = vmax.f32 %v305_v28, 0.0 }
  0x8f   : > { %v719_v11 = vshll.u32 %v2297_v63, 16  ;;  %v623_v4 = vshll.u32 %v2301_v1, 16  ;;  %v717_v17 = vshrl.u32 %v2297_v63, 16  ;;  %v621_v20 = vshrl.u32 %v2301_v1, 16 }
  0x90   : > { %v355_v52 = vpack.c.bf16 %v338_v34, %v337_v53 }
  0x91   : > { %v721_v45 = vrot.slane %v719_v11, 1  ;;  %v625_v16 = vrot.slane %v623_v4, 1  ;;  %v347_v11 = vpack.c.bf16 %v322_v40, %v321_v39 }
  0x92   : > { %877 = vrot.lane.b32.xlu1 %v2252_v44, %s1771_s29  ;;  %861 = vrot.lane.b32.xlu0 %v2255_v47, %s1771_s29  ;;  %v903_v24 = vpop.permute.xlu1 %902  ;;  %v466_v40 = vshll.u32 %v355_v52, 16 }
  0x93   : > { %v2293_v43 = vpop.permute.xlu0 %886  ;;  %v722_v41 = vor.u32 %v721_v45, %v717_v17  ;;  %v626_v49 = vor.u32 %v625_v16, %v621_v20  ;;  %v463_v45 = vshrl.u32 %v355_v52, 16  ;;  %v407_v26 = vshrl.u32 %v347_v11, 16 }
  0x94   : > { %v1130_v9 = vsel %vm1128_vm7, %v1097_v29, %v2293_v43  ;;  %v848_v29 = vrot.slane %v2319_v62, 1 }
  0x95   : > { %v2362_v7 = vsel %vm547_vm3, %v722_v41, %v726_v33  ;;  %v2365_v42 = vsel %vm547_vm3, %v626_v49, %v630_v50  ;;  %v465_v39 = vrot.slane %v463_v45, 7  ;;  %v409_v33 = vrot.slane %v407_v26, 7 }
  0x96   : > { %910 = vrot.lane.b32.xlu1 %v2217_v58, %s1773_s13  ;;  %894 = vrot.lane.b32.xlu0 %v2221_v59, %s1773_s13  ;;  %v2315_v61 = vpop.permute.xlu1 %1014  ;;  %v410_v49 = vshll.u32 %v347_v11, 16 }
  0x97   : > { %v999_v5 = vpop.permute.xlu0 %998  ;;  %v468_v50 = vor.u32 %v466_v40, %v465_v39  ;;  %v2421_v26 = vsel %vm1812_vm2, %v465_v39, 0 }
  0x9a   : > { %954 = vrot.lane.b32.xlu1 %v2270_v13, %s1776_s25  ;;  %938 = vrot.lane.b32.xlu0 %v2273_v14, %s1776_s25 }
  0x9b   : > { %v967_v32 = vpop.permute.xlu0 %966 }
  0x9c   : > { %v870_v23 = vpop.permute.xlu1 %869 }
  0x9e   : > { %990 = vrot.lane.b32.xlu1 %v2336_v10, %s1775_s22  ;;  %974 = vrot.lane.b32.xlu0 %v2339_v12, %s1775_s22 }
  0xa0   : > { %v983_v0 = vpop.permute.xlu1 %982  ;;  %v757_v46 = vpop.permute.xlu0 %756 }
  0xa1   : > { %v1080_v60 = vsel %vm1062_vm5, %v1974_v56, %v757_v46  ;;  %v230_v46 = vld [vmem:[%s1849_s26 + $0xf8] sm:$0xff] }
  0xa2   : > { %v1113_v4 = vsel %vm1095_vm6, %v1080_v60, %v870_v23  ;;  %1022 = vrot.lane.b32.xlu1 %v2297_v63, %s1774_s18  ;;  %1006 = vrot.lane.b32.xlu0 %v2301_v1, %s1774_s18 }
  0xa3   : > { %v1146_v28 = vsel %vm1128_vm7, %v1113_v4, %v903_v24  ;;  %v847_v4 = vrot.slane %v2297_v63, 1 }
  0xa4   : > { %v947_v17 = vpop.permute.xlu1 %946  ;;  %v931_v21 = vpop.permute.xlu0 %930 }
  0xa5   : > { %v1179_v20 = vsel %vm1161_vm8, %v1146_v28, %v947_v17  ;;  %v1163_v16 = vsel %vm1161_vm8, %v1130_v9, %v931_v21  ;;  %v823_v28 = vrot.slane %v2301_v1, 1  ;;  %v824_v9 = vrot.slane %v2325_v6, 1  ;;  %v1761_v21 = vld [vmem:[%s2716_s1] ss:$0 sm:$0xff] }
  0xa6   : > { %v1212_v24 = vsel %vm1194_vm9, %v1179_v20, %v983_v0  ;;  %v1196_v22 = vsel %vm1194_vm9, %v1163_v16, %v967_v32  ;;  %1054 = vrot.lane.b32.xlu1 %v2362_v7, %s1777_s27  ;;  %1038 = vrot.lane.b32.xlu0 %v2365_v42, %s1777_s27  ;;  %v412_v0 = vor.u32 %v410_v49, %v409_v33  ;;  %v2426_v6 = vsel %vm1812_vm2, %v409_v33, 0 }
  0xa7   : > { %v1245_v43 = vsel %vm1227_vm10, %v1212_v24, %v2315_v61  ;;  %v1229_v23 = vsel %vm1227_vm10, %v1196_v22, %v999_v5  ;;  %v2431_v22 = vsel %vm804_vm4, %v847_v4, %v848_v29  ;;  %v640_v49 = vshll.u32 %v2426_v6, 16 }
  0xa8   : > { %v1047_v53 = vpop.permute.xlu1 %1046  ;;  %v1031_v34 = vpop.permute.xlu0 %1030  ;;  %v2405_v11 = vsel %vm1812_vm2, 0, %v412_v0 }
  0xa9   : > { %v1286_v32 = vsel %vm1260_vm11, %v1245_v43, %v1047_v53  ;;  %v1262_v41 = vsel %vm1260_vm11, %v1229_v23, %v1031_v34  ;;  %v635_v62 = vshll.u32 %v2405_v11, 16  ;;  %v2434_v43 = vsel %vm804_vm4, %v823_v28, %v824_v9 }
  0xaa   : > { %766 = vrot.lane.b32.xlu1 %v2270_v13, %s1772_s6  ;;  %1526 = vmatmul.mubr.bf16.vlgmr.msra.gmra.mxu1 %v1286_v32  ;;  %v1760_v13 = vld [vmem:[%s2715_s0] ss:$0 sm:$0xff]  ;;  %v736_v34 = vshll.u32 %v2421_v26, 16 }
  0xab   : > { %750 = vrot.lane.b32.xlu0 %v2273_v14, %s1772_s6  ;;  %1462 = vmatmul.mubr.bf16.vlgmr.msra.gmra.mxu0 %v1262_v41  ;;  %v268_v14 = vmul.f32 %v1760_v13, %v229_v51  ;;  %v633_v41 = vshrl.u32 %v2405_v11, 16  ;;  %v637_v33 = vrot.slane %v635_v62, 1 }
  0xac   : > { %v759_v61 = vpop.permute.xlu1 %758  ;;  %v743_v5 = vpop.permute.xlu0 %742  ;;  %1698 = vmatprep.mubr.msk.bf16.mxu0 %vm1062_vm5, %v2177_v38  ;;  %1706 = vmatprep.mubr.msk.bf16.mxu1 %vm1062_vm5, %v2174_v37  ;;  %v2401_v38 = vsel %vm1812_vm2, 0, %v468_v50  ;;  %v269_v37 = vmul.f32 %v1760_v13, %v230_v46  ;;  %v738_v0 = vrot.slane %v736_v34, 1 }
  0xad   : > { %v731_v17 = vshll.u32 %v2401_v38, 16  ;;  %v307_v45 = vadd.f32 %v1761_v21, %v268_v14  ;;  %v729_v23 = vshrl.u32 %v2401_v38, 16  ;;  %v638_v14 = vor.u32 %v637_v33, %v633_v41 }
  0xae   : > { %879 = vrot.lane.b32.xlu1 %v2336_v10, %s1771_s29  ;;  %v308_v24 = vadd.f32 %v1761_v21, %v269_v37  ;;  %v642_v37 = vrot.slane %v640_v49, 1  ;;  %v1082_v29 = vsel %vm1062_vm5, %v1928_v31, %v759_v61  ;;  %v1066_v28 = vsel %vm1062_vm5, %v1937_v35, %v743_v5 }
  0xaf   : > { %863 = vrot.lane.b32.xlu0 %v2339_v12, %s1771_s29  ;;  %v733_v53 = vrot.slane %v731_v17, 1  ;;  %v339_v39 = vmax.f32 %v307_v45, 0.0 }
  0xb0   : > { %v872_v52 = vpop.permute.xlu1 %871  ;;  %v856_v60 = vpop.permute.xlu0 %855  ;;  %v340_v50 = vmax.f32 %v308_v24, 0.0  ;;  %v2460_v24 = vsel %vm547_vm3, %v638_v14, %v642_v37  ;;  %v826_v37 = vrot.slane %v2405_v11, 1 }
  0xb1   : > { %v734_v51 = vor.u32 %v733_v53, %v729_v23  ;;  %v1115_v17 = vsel %vm1095_vm6, %v1082_v29, %v872_v52  ;;  %v1099_v21 = vsel %vm1095_vm6, %v1066_v28, %v856_v60 }
  0xb2   : > { %912 = vrot.lane.b32.xlu1 %v2297_v63, %s1773_s13  ;;  %v356_v4 = vpack.c.bf16 %v340_v50, %v339_v39 }
  0xb3   : > { %896 = vrot.lane.b32.xlu0 %v2301_v1, %s1773_s13  ;;  %v2455_v9 = vsel %vm547_vm3, %v734_v51, %v738_v0 }
  0xb4   : > { %v905_v20 = vpop.permute.xlu1 %904  ;;  %v889_v16 = vpop.permute.xlu0 %888  ;;  %v470_v23 = vshrl.u32 %v356_v4, 16 }
  0xb5   : > { %v1148_v61 = vsel %vm1128_vm7, %v1115_v17, %v905_v20  ;;  %v1132_v35 = vsel %vm1128_vm7, %v1099_v21, %v889_v16 }
  0xb6   : > { %956 = vrot.lane.b32.xlu1 %v2362_v7, %s1776_s25  ;;  %v472_v41 = vrot.slane %v470_v23, 7 }
  0xb7   : > { %940 = vrot.lane.b32.xlu0 %v2365_v42, %s1776_s25 }
  0xb8   : > { %v949_v40 = vpop.permute.xlu1 %948  ;;  %v933_v32 = vpop.permute.xlu0 %932  ;;  %v546_v29 = vsel %vm1812_vm2, %v472_v41, 0 }
  0xb9   : > { %v1181_v5 = vsel %vm1161_vm8, %v1148_v61, %v949_v40  ;;  %v1165_v53 = vsel %vm1161_vm8, %v1132_v35, %v933_v32  ;;  %v473_v40 = vshll.u32 %v356_v4, 16  ;;  %v827_v4 = vrot.slane %v2426_v6, 1 }
  0xba   : > { %992 = vrot.lane.b32.xlu1 %v2431_v22, %s1775_s22  ;;  %v926_v21 = vshll.u32 %v546_v29, 16 }
  0xbb   : > { %976 = vrot.lane.b32.xlu0 %v2434_v43, %s1775_s22  ;;  %v475_v51 = vor.u32 %v473_v40, %v472_v41  ;;  %v2512_v6 = vsel %vm804_vm4, %v826_v37, %v827_v4 }
  0xbc   : > { %v985_v46 = vpop.permute.xlu1 %984  ;;  %v969_v13 = vpop.permute.xlu0 %968  ;;  %v928_v23 = vrot.slane %v926_v21, 1 }
  0xbd   : > { %v1214_v52 = vsel %vm1194_vm9, %v1181_v5, %v985_v46  ;;  %v1198_v60 = vsel %vm1194_vm9, %v1165_v53, %v969_v13 }
  0xbe   : > { %1024 = vrot.lane.b32.xlu1 %v2401_v38, %s1774_s18 }
  0xbf   : > { %1008 = vrot.lane.b32.xlu0 %v2405_v11, %s1774_s18 }
  0xc0   : > { %v1017_v45 = vpop.permute.xlu1 %1016  ;;  %v1001_v62 = vpop.permute.xlu0 %1000 }
  0xc1   : > { %v1247_v34 = vsel %vm1227_vm10, %v1214_v52, %v1017_v45  ;;  %v1231_v20 = vsel %vm1227_vm10, %v1198_v60, %v1001_v62 }
  0xc2   : > { %1056 = vrot.lane.b32.xlu1 %v2455_v9, %s1777_s27 }
  0xc3   : > { %1040 = vrot.lane.b32.xlu0 %v2460_v24, %s1777_s27 }
  0xc4   : > { %v1049_v39 = vpop.permute.xlu1 %1048  ;;  %v1033_v16 = vpop.permute.xlu0 %1032 }
  0xc5   : > { %v1289_v32 = vsel %vm1260_vm11, %v1247_v34, %v1049_v39  ;;  %v1265_v33 = vsel %vm1260_vm11, %v1231_v20, %v1033_v16 }
  0xc6   : > { %768 = vrot.lane.b32.xlu1 %v2362_v7, %s1772_s6  ;;  %1534 = vmatmul.mubr.bf16.gmra.mxu1 %v1289_v32 }
  0xc7   : > { %752 = vrot.lane.b32.xlu0 %v2365_v42, %s1772_s6  ;;  %1470 = vmatmul.mubr.bf16.gmra.mxu0 %v1265_v33  ;;  %v2490_v42 = vsel %vm1812_vm2, 0, %v475_v51 }
  0xc8   : > { %v761_v49 = vpop.permute.xlu1 %760  ;;  %v745_v50 = vpop.permute.xlu0 %744  ;;  %1699 = vmatprep.mubr.msk.bf16.mxu0 %vm1062_vm5, %v2255_v47  ;;  %1707 = vmatprep.mubr.msk.bf16.mxu1 %vm1062_vm5, %v2252_v44  ;;  %v850_v44 = vrot.slane %v2401_v38, 1  ;;  %v851_v47 = vrot.slane %v2421_v26, 1  ;;  %v921_v46 = vshll.u32 %v2490_v42, 16  ;;  %v919_v26 = vshrl.u32 %v2490_v42, 16 }
  0xc9   : > { %v1084_v5 = vsel %vm1062_vm5, %v1941_v36, %v761_v49  ;;  %v1068_v53 = vsel %vm1062_vm5, %v1959_v48, %v745_v50 }
  0xca   : > { %881 = vrot.lane.b32.xlu1 %v2431_v22, %s1771_s29  ;;  %v2508_v28 = vsel %vm804_vm4, %v850_v44, %v851_v47  ;;  %v923_v17 = vrot.slane %v921_v46, 1 }
  0xcb   : > { %865 = vrot.lane.b32.xlu0 %v2434_v43, %s1771_s29 }
  0xcc   : > { %v874_v7 = vpop.permute.xlu1 %873  ;;  %v858_v0 = vpop.permute.xlu0 %857  ;;  %v924_v2 = vor.u32 %v923_v17, %v919_v26 }
  0xcd   : > { %v1117_v60 = vsel %vm1095_vm6, %v1084_v5, %v874_v7  ;;  %v1101_v34 = vsel %vm1095_vm6, %v1068_v53, %v858_v0 }
  0xce   : > { %914 = vrot.lane.b32.xlu1 %v2401_v38, %s1773_s13  ;;  %v929_v52 = vsel %vm547_vm3, %v924_v2, %v928_v23 }
  0xcf   : > { %898 = vrot.lane.b32.xlu0 %v2405_v11, %s1773_s13 }
  0xd0   : > { %v907_v13 = vpop.permute.xlu1 %906  ;;  %v891_v14 = vpop.permute.xlu0 %890 }
  0xd1   : > { %v1150_v16 = vsel %vm1128_vm7, %v1117_v60, %v907_v13  ;;  %v1134_v41 = vsel %vm1128_vm7, %v1101_v34, %v891_v14 }
  0xd2   : > { %958 = vrot.lane.b32.xlu1 %v2455_v9, %s1776_s25 }
  0xd3   : > { %942 = vrot.lane.b32.xlu0 %v2460_v24, %s1776_s25 }
  0xd4   : > { %v951_v45 = vpop.permute.xlu1 %950  ;;  %v935_v62 = vpop.permute.xlu0 %934 }
  0xd5   : > { %v1183_v36 = vsel %vm1161_vm8, %v1150_v16, %v951_v45  ;;  %v1167_v40 = vsel %vm1161_vm8, %v1134_v41, %v935_v62 }
  0xd6   : > { %994 = vrot.lane.b32.xlu1 %v2508_v28, %s1775_s22 }
  0xd7   : > { %978 = vrot.lane.b32.xlu0 %v2512_v6, %s1775_s22 }
  0xd8   : > { %v987_v61 = vpop.permute.xlu1 %986  ;;  %v971_v35 = vpop.permute.xlu0 %970 }
  0xd9   : > { %v1216_v48 = vsel %vm1194_vm9, %v1183_v36, %v987_v61  ;;  %v1200_v32 = vsel %vm1194_vm9, %v1167_v40, %v971_v35 }
  0xda   : > { %1026 = vrot.lane.b32.xlu1 %v2490_v42, %s1774_s18 }
  0xdb   : > { %1010 = vrot.lane.b32.xlu0 %v1974_v56, %s1774_s18 }
  0xdc   : > { %v1019_v20 = vpop.permute.xlu1 %1018  ;;  %v1003_v39 = vpop.permute.xlu0 %1002 }
  0xdd   : > { %v1249_v33 = vsel %vm1227_vm10, %v1216_v48, %v1019_v20  ;;  %v1233_v49 = vsel %vm1227_vm10, %v1200_v32, %v1003_v39 }
  0xde   : > { %1058 = vrot.lane.b32.xlu1 %v929_v52, %s1777_s27 }
  0xdf   : > { %1042 = vrot.lane.b32.xlu0 %v2016_v30, %s1777_s27 }
  0xe0   : > { %v1051_v50 = vpop.permute.xlu1 %1050  ;;  %v1035_v51 = vpop.permute.xlu0 %1034 }
  0xe1   : > { %v1292_v7 = vsel %vm1260_vm11, %v1249_v33, %v1051_v50  ;;  %v1268_v0 = vsel %vm1260_vm11, %v1233_v49, %v1035_v51 }
  0xe2   : > { %770 = vrot.lane.b32.xlu1 %v2455_v9, %s1772_s6  ;;  %1542 = vmatmul.mubr.bf16.gmra.mxu1 %v1292_v7 }
  0xe3   : > { %754 = vrot.lane.b32.xlu0 %v2460_v24, %s1772_s6  ;;  %1478 = vmatmul.mubr.bf16.gmra.mxu0 %v1268_v0  ;;  %v963_v24 = vrot.slane %v2490_v42, 1 }
  0xe4   : > { %v763_v44 = vpop.permute.xlu1 %762  ;;  %v747_v47 = vpop.permute.xlu0 %746  ;;  %1700 = vmatprep.mubr.msk.bf16.mxu0 %vm1062_vm5, %v2339_v12  ;;  %1708 = vmatprep.mubr.msk.bf16.mxu1 %vm1062_vm5, %v2336_v10  ;;  %v964_v12 = vrot.slane %v546_v29, 1 }
  0xe5   : > { %v1086_v29 = vsel %vm1062_vm5, %v2071_v18, %v763_v44 }
  0xe6   : > { %883 = vrot.lane.b32.xlu1 %v2508_v28, %s1771_s29  ;;  %v2563_v10 = vsel %vm804_vm4, %v963_v24, %v964_v12 }
  0xe7   : > { %867 = vrot.lane.b32.xlu0 %v2512_v6, %s1771_s29 }
  0xe8   : > { %v876_v9 = vpop.permute.xlu1 %875  ;;  %v860_v46 = vpop.permute.xlu0 %859 }
  0xe9   : > { %v1119_v26 = vsel %vm1095_vm6, %v1086_v29, %v876_v9 }
  0xea   : > { %916 = vrot.lane.b32.xlu1 %v2490_v42, %s1773_s13 }
  0xeb   : > { %900 = vrot.lane.b32.xlu0 %v1974_v56, %s1773_s13 }
  0xec   : > { %v909_v13 = vpop.permute.xlu1 %908  ;;  %v893_v14 = vpop.permute.xlu0 %892 }
  0xed   : > { %v1152_v62 = vsel %vm1128_vm7, %v1119_v26, %v909_v13 }
  0xee   : > { %960 = vrot.lane.b32.xlu1 %v929_v52, %s1776_s25 }
  0xef   : > { %944 = vrot.lane.b32.xlu0 %v2016_v30, %s1776_s25  ;;  %v1070_v30 = vsel %vm1062_vm5, %v2075_v19, %v747_v47 }
  0xf0   : > { %v953_v37 = vpop.permute.xlu1 %952  ;;  %v937_v4 = vpop.permute.xlu0 %936  ;;  %v1103_v17 = vsel %vm1095_vm6, %v1070_v30, %v860_v46 }
  0xf1   : > { %v1136_v2 = vsel %vm1128_vm7, %v1103_v17, %v893_v14 }
  0xf2   : > { %996 = vrot.lane.b32.xlu1 %v2563_v10, %s1775_s22  ;;  %v1169_v18 = vsel %vm1161_vm8, %v1136_v2, %v937_v4 }
  0xf3   : > { %980 = vrot.lane.b32.xlu0 %v1992_v8, %s1775_s22 }
  0xf4   : > { %v989_v56 = vpop.permute.xlu1 %988  ;;  %v973_v42 = vpop.permute.xlu0 %972 }
  0xf6   : > { %1028 = vrot.lane.b32.xlu1 %v1820_v3, %s1774_s18  ;;  %v1185_v3 = vsel %vm1161_vm8, %v1152_v62, %v953_v37 }
  0xf7   : > { %1012 = vrot.lane.b32.xlu0 %v1928_v31, %s1774_s18  ;;  %v1218_v19 = vsel %vm1194_vm9, %v1185_v3, %v989_v56  ;;  %v1202_v31 = vsel %vm1194_vm9, %v1169_v18, %v973_v42 }
  0xf8   : > { %v1021_v21 = vpop.permute.xlu1 %1020  ;;  %v1005_v45 = vpop.permute.xlu0 %1004 }
  0xf9   : > { %v1251_v23 = vsel %vm1227_vm10, %v1218_v19, %v1021_v21  ;;  %v1235_v61 = vsel %vm1227_vm10, %v1202_v31, %v1005_v45 }
  0xfa   : > { %1060 = vrot.lane.b32.xlu1 %v1870_v27, %s1777_s27 }
  0xfb   : > { %1044 = vrot.lane.b32.xlu0 %v2010_v25, %s1777_s27 }
  0xfc   : > { %v1053_v35 = vpop.permute.xlu1 %1052  ;;  %v1037_v5 = vpop.permute.xlu0 %1036 }
  0xfd   : > { %v1271_v53 = vsel %vm1260_vm11, %v1235_v61, %v1037_v5  ;;  %v1295_v52 = vsel %vm1260_vm11, %v1251_v23, %v1053_v35 }
  0xfe   : > { %1486 = vmatmul.mubr.bf16.gmra.mxu0 %v1271_v53  ;;  %1550 = vmatmul.mubr.bf16.gmra.mxu1 %v1295_v52 }
  0xff   : > { %1701 = vmatprep.mubr.msk.bf16.mxu0 %vm1062_vm5, %v2434_v43  ;;  %1709 = vmatprep.mubr.msk.bf16.mxu1 %vm1062_vm5, %v2431_v22 }
 0x100   : > { %v765_v27 = vpop.permute.xlu1 %764  ;;  %v749_v25 = vpop.permute.xlu0 %748 }
 0x101   : > { %v1088_v48 = vsel %vm1062_vm5, %v2139_v54, %v765_v27  ;;  %v1072_v32 = vsel %vm1062_vm5, %v2143_v55, %v749_v25 }
 0x104   : > { %v878_v60 = vpop.permute.xlu1 %877  ;;  %v862_v34 = vpop.permute.xlu0 %861 }
 0x105   : > { %v1121_v43 = vsel %vm1095_vm6, %v1088_v48, %v878_v60  ;;  %v1105_v22 = vsel %vm1095_vm6, %v1072_v32, %v862_v34 }
 0x108   : > { %v911_v20 = vpop.permute.xlu1 %910  ;;  %v895_v39 = vpop.permute.xlu0 %894 }
 0x109   : > { %v1154_v50 = vsel %vm1128_vm7, %v1121_v43, %v911_v20  ;;  %v1138_v51 = vsel %vm1128_vm7, %v1105_v22, %v895_v39 }
 0x10c   : > { %v955_v16 = vpop.permute.xlu1 %954  ;;  %v939_v41 = vpop.permute.xlu0 %938 }
 0x10d   : > { %v1187_v7 = vsel %vm1161_vm8, %v1154_v50, %v955_v16  ;;  %v1171_v0 = vsel %vm1161_vm8, %v1138_v51, %v939_v41 }
 0x110   : > { %v991_v36 = vpop.permute.xlu1 %990  ;;  %v975_v40 = vpop.permute.xlu0 %974 }
 0x111   : > { %v1220_v44 = vsel %vm1194_vm9, %v1187_v7, %v991_v36  ;;  %v1204_v54 = vsel %vm1194_vm9, %v1171_v0, %v975_v40 }
 0x114   : > { %v1023_v33 = vpop.permute.xlu1 %1022  ;;  %v1007_v49 = vpop.permute.xlu0 %1006 }
 0x115   : > { %v1253_v55 = vsel %vm1227_vm10, %v1220_v44, %v1023_v33  ;;  %v1237_v47 = vsel %vm1227_vm10, %v1204_v54, %v1007_v49 }
 0x118   : > { %v1055_v9 = vpop.permute.xlu1 %1054  ;;  %v1039_v46 = vpop.permute.xlu0 %1038 }
 0x119   : > { %v1274_v24 = vsel %vm1260_vm11, %v1237_v47, %v1039_v46  ;;  %v1298_v12 = vsel %vm1260_vm11, %v1253_v55, %v1055_v9 }
 0x11a   : > { %1494 = vmatmul.mubr.bf16.gmra.mxu0 %v1274_v24  ;;  %1558 = vmatmul.mubr.bf16.gmra.mxu1 %v1298_v12 }
 0x11b   : > { %1702 = vmatprep.mubr.msk.bf16.mxu0 %vm1062_vm5, %v2512_v6  ;;  %1710 = vmatprep.mubr.msk.bf16.mxu1 %vm1062_vm5, %v2508_v28 }
 0x11c   : > { %v767_v13 = vpop.permute.xlu1 %766 }
 0x11d   : > { %v751_v14 = vpop.permute.xlu0 %750  ;;  %v1090_v21 = vsel %vm1062_vm5, %v2217_v58, %v767_v13 }
 0x11e   : > { %v1074_v45 = vsel %vm1062_vm5, %v2221_v59, %v751_v14 }
 0x120   : > { %v880_v37 = vpop.permute.xlu1 %879 }
 0x121   : > { %v864_v4 = vpop.permute.xlu0 %863  ;;  %v1123_v6 = vsel %vm1095_vm6, %v1090_v21, %v880_v37 }
 0x122   : > { %v1107_v28 = vsel %vm1095_vm6, %v1074_v45, %v864_v4 }
 0x124   : > { %v913_v56 = vpop.permute.xlu1 %912 }
 0x125   : > { %v897_v42 = vpop.permute.xlu0 %896  ;;  %v1156_v2 = vsel %vm1128_vm7, %v1123_v6, %v913_v56 }
 0x126   : > { %v1140_v18 = vsel %vm1128_vm7, %v1107_v28, %v897_v42 }
 0x128   : > { %v957_v29 = vpop.permute.xlu1 %956 }
 0x129   : > { %v941_v30 = vpop.permute.xlu0 %940  ;;  %v1189_v19 = vsel %vm1161_vm8, %v1156_v2, %v957_v29 }
 0x12a   : > { %v1173_v31 = vsel %vm1161_vm8, %v1140_v18, %v941_v30 }
 0x12c   : > { %v993_v26 = vpop.permute.xlu1 %992 }
 0x12d   : > { %v977_v17 = vpop.permute.xlu0 %976  ;;  %v1222_v23 = vsel %vm1194_vm9, %v1189_v19, %v993_v26 }
 0x12e   : > { %v1206_v58 = vsel %vm1194_vm9, %v1173_v31, %v977_v17 }
 0x130   : > { %v1025_v62 = vpop.permute.xlu1 %1024 }
 0x131   : > { %v1009_v3 = vpop.permute.xlu0 %1008  ;;  %v1255_v59 = vsel %vm1227_vm10, %v1222_v23, %v1025_v62 }
 0x132   : > { %v1239_v35 = vsel %vm1227_vm10, %v1206_v58, %v1009_v3 }
 0x134   : > { %v1057_v61 = vpop.permute.xlu1 %1056 }
 0x135   : > { %v1041_v5 = vpop.permute.xlu0 %1040  ;;  %v1301_v53 = vsel %vm1260_vm11, %v1255_v59, %v1057_v61 }
 0x136   : > { %v1277_v52 = vsel %vm1260_vm11, %v1239_v35, %v1041_v5  ;;  %1566 = vmatmul.mubr.bf16.gmra.mxu1 %v1301_v53 }
 0x137   : > { %1502 = vmatmul.mubr.bf16.gmra.mxu0 %v1277_v52  ;;  %1711 = vmatprep.mubr.msk.bf16.mxu1 %vm1062_vm5, %v2563_v10 }
 0x138   : > { %v769_v27 = vpop.permute.xlu1 %768  ;;  %1703 = vmatprep.mubr.msk.bf16.mxu0 %vm1062_vm5, %v1992_v8 }
 0x139   : > { %v753_v25 = vpop.permute.xlu0 %752  ;;  %v1092_v48 = vsel %vm1062_vm5, %v2297_v63, %v769_v27 }
 0x13a   : > { %v1076_v32 = vsel %vm1062_vm5, %v2301_v1, %v753_v25 }
 0x13c   : > { %v882_v60 = vpop.permute.xlu1 %881 }
 0x13d   : > { %v866_v34 = vpop.permute.xlu0 %865  ;;  %v1125_v10 = vsel %vm1095_vm6, %v1092_v48, %v882_v60 }
 0x13e   : > { %v1109_v8 = vsel %vm1095_vm6, %v1076_v32, %v866_v34 }
 0x140   : > { %v915_v20 = vpop.permute.xlu1 %914 }
 0x141   : > { %v899_v39 = vpop.permute.xlu0 %898  ;;  %v1158_v22 = vsel %vm1128_vm7, %v1125_v10, %v915_v20 }
 0x142   : > { %v1142_v49 = vsel %vm1128_vm7, %v1109_v8, %v899_v39 }
 0x144   : > { %v959_v16 = vpop.permute.xlu1 %958 }
 0x145   : > { %v943_v41 = vpop.permute.xlu0 %942  ;;  %v1191_v50 = vsel %vm1161_vm8, %v1158_v22, %v959_v16 }
 0x146   : > { %v1175_v51 = vsel %vm1161_vm8, %v1142_v49, %v943_v41 }
 0x148   : > { %v995_v36 = vpop.permute.xlu1 %994 }
 0x149   : > { %v979_v40 = vpop.permute.xlu0 %978  ;;  %v1224_v7 = vsel %vm1194_vm9, %v1191_v50, %v995_v36 }
 0x14a   : > { %v1208_v63 = vsel %vm1194_vm9, %v1175_v51, %v979_v40 }
 0x14c   : > { %v1027_v43 = vpop.permute.xlu1 %1026 }
 0x14d   : > { %v1011_v33 = vpop.permute.xlu0 %1010  ;;  %v1257_v1 = vsel %vm1227_vm10, %v1224_v7, %v1027_v43 }
 0x14e   : > { %v1241_v44 = vsel %vm1227_vm10, %v1208_v63, %v1011_v33 }
 0x150   : > { %v1059_v0 = vpop.permute.xlu1 %1058 }
 0x151   : > { %v1043_v54 = vpop.permute.xlu0 %1042  ;;  %v1304_v55 = vsel %vm1260_vm11, %v1257_v1, %v1059_v0 }
 0x152   : > { %v1280_v47 = vsel %vm1260_vm11, %v1241_v44, %v1043_v54  ;;  %1574 = vmatmul.mubr.bf16.gmra.mxu1 %v1304_v55 }
 0x153   : > { %1510 = vmatmul.mubr.bf16.gmra.mxu0 %v1280_v47  ;;  %1712 = vmatprep.mubr.msk.bf16.mxu1 %vm1062_vm5, %v1842_v15 }
 0x154   : > { %v771_v9 = vpop.permute.xlu1 %770  ;;  %1704 = vmatprep.mubr.msk.bf16.mxu0 %vm1062_vm5, %v1977_v57 }
 0x155   : > { %v755_v46 = vpop.permute.xlu0 %754  ;;  %v1094_v29 = vsel %vm1062_vm5, %v2401_v38, %v771_v9 }
 0x156   : > { %v1078_v15 = vsel %vm1062_vm5, %v2405_v11, %v755_v46 }
 0x158   : > { %v884_v24 = vpop.permute.xlu1 %883 }
 0x159   : > { %v868_v12 = vpop.permute.xlu0 %867  ;;  %v1127_v30 = vsel %vm1095_vm6, %v1094_v29, %v884_v24 }
 0x15a   : > { %v1111_v57 = vsel %vm1095_vm6, %v1078_v15, %v868_v12 }
 0x15c   : > { %v917_v13 = vpop.permute.xlu1 %916 }
 0x15d   : > { %v901_v14 = vpop.permute.xlu0 %900  ;;  %v1160_v17 = vsel %vm1128_vm7, %v1127_v30, %v917_v13 }
 0x15e   : > { %v1144_v38 = vsel %vm1128_vm7, %v1111_v57, %v901_v14 }
 0x160   : > { %v961_v37 = vpop.permute.xlu1 %960 }
 0x161   : > { %v945_v4 = vpop.permute.xlu0 %944  ;;  %v1193_v11 = vsel %vm1161_vm8, %v1160_v17, %v961_v37 }
 0x162   : > { %v1177_v6 = vsel %vm1161_vm8, %v1144_v38, %v945_v4 }
 0x164   : > { %v997_v56 = vpop.permute.xlu1 %996 }
 0x165   : > { %v981_v42 = vpop.permute.xlu0 %980  ;;  %v1226_v62 = vsel %vm1194_vm9, %v1193_v11, %v997_v56 }
 0x166   : > { %v1210_v2 = vsel %vm1194_vm9, %v1177_v6, %v981_v42 }
 0x168   : > { %v1029_v26 = vpop.permute.xlu1 %1028 }
 0x169   : > { %v1013_v21 = vpop.permute.xlu0 %1012  ;;  %v1259_v3 = vsel %vm1227_vm10, %v1226_v62, %v1029_v26 }
 0x16a   : > { %v1527_v45 = vpop.f32.mrf.mxu1  ;;  %v1243_v31 = vsel %vm1227_vm10, %v1210_v2, %v1013_v21 }
 0x16b   : > { %v1463_v28 = vpop.f32.mrf.mxu0  ;;  %1606 = vst [vmem:[%s2667_s7 + $0x80] sm:$0xff] %v1527_v45 }
 0x16c   : > { %1590 = vst [vmem:[%s2667_s7] sm:$0xff] %v1463_v28  ;;  %v1061_v18 = vpop.permute.xlu1 %1060  ;;  %v1529_v19 = vpop.f32.mrf.mxu1 }
 0x16d   : > { %v1465_v23 = vpop.f32.mrf.mxu0  ;;  %v1045_v58 = vpop.permute.xlu0 %1044  ;;  %v1307_v59 = vsel %vm1260_vm11, %v1259_v3, %v1061_v18 }
 0x16e   : > { %v1283_v61 = vsel %vm1260_vm11, %v1243_v31, %v1045_v58  ;;  %v1530_v35 = vpop.f32.mrf.mxu1  ;;  %1582 = vmatmul.mubr.bf16.gmra.mxu1 %v1307_v59 }
 0x16f   : > { %v1466_v5 = vpop.f32.mrf.mxu0  ;;  %1518 = vmatmul.mubr.bf16.gmra.mxu0 %v1283_v61  ;;  %1607 = vst [vmem:[%s2667_s7 + $0x88] sm:$0xff] %v1530_v35 }
 0x170   : > { %1591 = vst [vmem:[%s2667_s7 + $0x8] sm:$0xff] %v1466_v5  ;;  %v1532_v53 = vpop.f32.mrf.mxu1 }
 0x171   : > { %v1468_v52 = vpop.f32.mrf.mxu0 }
 0x186   : > { %v1535_v27 = vpop.f32.mrf.mxu1 }
 0x187   : > { %v1471_v25 = vpop.f32.mrf.mxu0  ;;  %1608 = vst [vmem:[%s2667_s7 + $0x90] sm:$0xff] %v1535_v27 }
 0x188   : > { %1592 = vst [vmem:[%s2667_s7 + $0x10] sm:$0xff] %v1471_v25  ;;  %v1537_v60 = vpop.f32.mrf.mxu1 }
 0x189   : > { %v1473_v34 = vpop.f32.mrf.mxu0 }
 0x18a   : > { %v1538_v20 = vpop.f32.mrf.mxu1 }
 0x18b   : > { %v1474_v39 = vpop.f32.mrf.mxu0  ;;  %1609 = vst [vmem:[%s2667_s7 + $0x98] sm:$0xff] %v1538_v20 }
 0x18c   : > { %1593 = vst [vmem:[%s2667_s7 + $0x18] sm:$0xff] %v1474_v39  ;;  %v1540_v16 = vpop.f32.mrf.mxu1 }
 0x18d   : > { %v1476_v41 = vpop.f32.mrf.mxu0 }
 0x1a2   : > { %v1543_v36 = vpop.f32.mrf.mxu1 }
 0x1a3   : > { %v1479_v40 = vpop.f32.mrf.mxu0  ;;  %1610 = vst [vmem:[%s2667_s7 + $0xa0] sm:$0xff] %v1543_v36 }
 0x1a4   : > { %1594 = vst [vmem:[%s2667_s7 + $0x20] sm:$0xff] %v1479_v40  ;;  %v1545_v48 = vpop.f32.mrf.mxu1 }
 0x1a5   : > { %v1481_v32 = vpop.f32.mrf.mxu0 }
 0x1a6   : > { %v1546_v10 = vpop.f32.mrf.mxu1 }
 0x1a7   : > { %v1482_v43 = vpop.f32.mrf.mxu0  ;;  %1611 = vst [vmem:[%s2667_s7 + $0xa8] sm:$0xff] %v1546_v10 }
 0x1a8   : > { %1595 = vst [vmem:[%s2667_s7 + $0x28] sm:$0xff] %v1482_v43  ;;  %v1548_v8 = vpop.f32.mrf.mxu1 }
 0x1a9   : > { %v1484_v22 = vpop.f32.mrf.mxu0 }
 0x1be   : > { %v1487_v33 = vpop.f32.mrf.mxu0  ;;  %v1551_v49 = vpop.f32.mrf.mxu1 }
 0x1bf   : > { %1596 = vst [vmem:[%s2667_s7 + $0x30] sm:$0xff] %v1487_v33  ;;  %1612 = vst [vmem:[%s2667_s7 + $0xb0] sm:$0xff] %v1551_v49 }
 0x1c0   : > { %v1489_v50 = vpop.f32.mrf.mxu0  ;;  %v1553_v51 = vpop.f32.mrf.mxu1 }
 0x1c2   : > { %v1490_v7 = vpop.f32.mrf.mxu0  ;;  %v1554_v63 = vpop.f32.mrf.mxu1 }
 0x1c3   : > { %1597 = vst [vmem:[%s2667_s7 + $0x38] sm:$0xff] %v1490_v7  ;;  %1613 = vst [vmem:[%s2667_s7 + $0xb8] sm:$0xff] %v1554_v63 }
 0x1c4   : > { %v1492_v1 = vpop.f32.mrf.mxu0  ;;  %v1556_v0 = vpop.f32.mrf.mxu1 }
 0x1da   : > { %v1495_v44 = vpop.f32.mrf.mxu0  ;;  %v1559_v54 = vpop.f32.mrf.mxu1 }
 0x1db   : > { %1598 = vst [vmem:[%s2667_s7 + $0x40] sm:$0xff] %v1495_v44  ;;  %1614 = vst [vmem:[%s2667_s7 + $0xc0] sm:$0xff] %v1559_v54 }
 0x1dc   : > { %v1497_v55 = vpop.f32.mrf.mxu0  ;;  %v1561_v47 = vpop.f32.mrf.mxu1 }
 0x1de   : > { %v1498_v9 = vpop.f32.mrf.mxu0  ;;  %v1562_v46 = vpop.f32.mrf.mxu1 }
 0x1df   : > { %1599 = vst [vmem:[%s2667_s7 + $0x48] sm:$0xff] %v1498_v9  ;;  %1615 = vst [vmem:[%s2667_s7 + $0xc8] sm:$0xff] %v1562_v46 }
 0x1e0   : > { %v1500_v24 = vpop.f32.mrf.mxu0  ;;  %v1564_v12 = vpop.f32.mrf.mxu1 }
 0x1f6   : > { %v1567_v13 = vpop.f32.mrf.mxu1 }
 0x1f7   : > { %v1503_v14 = vpop.f32.mrf.mxu0  ;;  %1616 = vst [vmem:[%s2667_s7 + $0xd0] sm:$0xff] %v1567_v13 }
 0x1f8   : > { %1600 = vst [vmem:[%s2667_s7 + $0x50] sm:$0xff] %v1503_v14  ;;  %v1569_v37 = vpop.f32.mrf.mxu1 }
 0x1f9   : > { %v1505_v4 = vpop.f32.mrf.mxu0 }
 0x1fa   : > { %v1570_v56 = vpop.f32.mrf.mxu1 }
 0x1fb   : > { %v1506_v42 = vpop.f32.mrf.mxu0  ;;  %1617 = vst [vmem:[%s2667_s7 + $0xd8] sm:$0xff] %v1570_v56 }
 0x1fc   : > { %1601 = vst [vmem:[%s2667_s7 + $0x58] sm:$0xff] %v1506_v42  ;;  %v1572_v29 = vpop.f32.mrf.mxu1 }
 0x1fd   : > { %v1508_v15 = vpop.f32.mrf.mxu0 }
 0x212   : > { %v1575_v30 = vpop.f32.mrf.mxu1 }
 0x213   : > { %v1511_v26 = vpop.f32.mrf.mxu0  ;;  %1618 = vst [vmem:[%s2667_s7 + $0xe0] sm:$0xff] %v1575_v30 }
 0x214   : > { %1602 = vst [vmem:[%s2667_s7 + $0x60] sm:$0xff] %v1511_v26  ;;  %v1577_v57 = vpop.f32.mrf.mxu1 }
 0x215   : > { %v1513_v17 = vpop.f32.mrf.mxu0 }
 0x216   : > { %v1578_v21 = vpop.f32.mrf.mxu1 }
 0x217   : > { %v1514_v38 = vpop.f32.mrf.mxu0  ;;  %1619 = vst [vmem:[%s2667_s7 + $0xe8] sm:$0xff] %v1578_v21 }
 0x218   : > { %1603 = vst [vmem:[%s2667_s7 + $0x68] sm:$0xff] %v1514_v38  ;;  %v1580_v11 = vpop.f32.mrf.mxu1 }
 0x219   : > { %v1516_v45 = vpop.f32.mrf.mxu0 }
 0x22e   : > { %v1583_v6 = vpop.f32.mrf.mxu1 }
 0x22f   : > { %v1519_v62 = vpop.f32.mrf.mxu0  ;;  %1620 = vst [vmem:[%s2667_s7 + $0xf0] sm:$0xff] %v1583_v6 }
 0x230   : > { %1604 = vst [vmem:[%s2667_s7 + $0x70] sm:$0xff] %v1519_v62  ;;  %v1585_v28 = vpop.f32.mrf.mxu1 }
 0x231   : > { %v1521_v2 = vpop.f32.mrf.mxu0 }
 0x232   : > { %v1586_v3 = vpop.f32.mrf.mxu1 }
 0x233   : > { %v1522_v18 = vpop.f32.mrf.mxu0  ;;  %1621 = vst [vmem:[%s2667_s7 + $0xf8] sm:$0xff] %v1586_v3 }
 0x234   : > { %1605 = vst [vmem:[%s2667_s7 + $0x78] sm:$0xff] %v1522_v18  ;;  %v1588_v19 = vpop.f32.mrf.mxu1 }
 0x235   : > { %v1524_v31 = vpop.f32.mrf.mxu0 }
 0x236 PF: > { %s14_s15 = sadd.s32 1, %s1768_s15  }
 0x237   : > { %p11_p4 = scmp.ge.s32.totalorder %s14_s15, 4  }
 0x239   :  { %13 = sbr.rel (!%p11_p4) target bundleno = 1 (0x1), region = 66 }

</bundles_post_ra>
